<compile_context>
chip_gen: v7x
topology: tpu7x:2x2x1
jax: 0.10.0
libtpu: 0.0.40
codegen_flags: <defaults>
</compile_context>

<pallas_src>
import functools

import jax
import jax.numpy as jnp
from jax.experimental import pallas as pl
from jax.experimental.pallas import tpu as pltpu


# ----------------------------------------------------------------------------- #
# Fused Pallas kernel: all L GIN layers + VN updates + pooling + head in one call
# ----------------------------------------------------------------------------- #
def _fused_gnn_kernel(h0_ref, a_ref, assign_ref, psum_ref, invc_ref, pw_ref, pb_ref,
                      gw1_ref, gw2_ref, vw1_ref, vw2_ref, bh_ref, bd_ref,
                      out_ref, h_scr, vn_scr, *, eps):
    l = pl.program_id(0)
    num_layers = pl.num_programs(0)
    is_last = l == num_layers - 1

    bf16 = jnp.bfloat16

    # initialize VMEM-resident activations on the first layer
    @pl.when(l == 0)
    def _init():
        h_scr[...] = h0_ref[...]
        vn_scr[...] = jnp.zeros_like(vn_scr)

    h = h_scr[...]
    vn = vn_scr[...]

    # add each node's graph virtual-node embedding:  h += vn[batch]
    hpost = h + jnp.dot(assign_ref[...], vn.astype(bf16),
                        preferred_element_type=jnp.float32)

    # GIN message passing: agg_i = sum_j A_ij * relu(hpost_j + bond_emb)
    msg = jnp.maximum(hpost + bd_ref[0:1, :], 0.0)
    agg = jnp.dot(a_ref[...], msg.astype(bf16), preferred_element_type=jnp.float32)
    if eps != 0.0:                       # static: skip the N*D VPU multiply when eps == 0
        z = (1.0 + eps) * hpost + agg
    else:
        z = hpost + agg

    # GIN MLP (BN affines folded into weights): Linear(D,2D) -> ReLU -> Linear(2D,D)
    z = jnp.dot(z.astype(bf16), gw1_ref[...],
                preferred_element_type=jnp.float32) + bh_ref[0:1, :]
    z = jnp.maximum(z, 0.0)
    z = jnp.dot(z.astype(bf16), gw2_ref[...],
                preferred_element_type=jnp.float32) + bd_ref[1:2, :]

    # dropout = identity (eval)
    @pl.when(jnp.logical_not(is_last))
    def _not_last():
        # ReLU on all but the last layer, keep h resident in VMEM
        h_scr[...] = jnp.maximum(z, 0.0)
        # virtual-node update (BN folded):  vn = relu(MLP(add_pool(hpost) + vn))
        pooled = jnp.dot(psum_ref[...], hpost.astype(bf16),
                         preferred_element_type=jnp.float32) + vn
        t = jnp.dot(pooled.astype(bf16), vw1_ref[...],
                    preferred_element_type=jnp.float32) + bh_ref[1:2, :]
        t = jnp.maximum(t, 0.0)
        t = jnp.dot(t.astype(bf16), vw2_ref[...],
                    preferred_element_type=jnp.float32) + bd_ref[2:3, :]
        vn_scr[...] = jnp.maximum(t, 0.0)

    # final layer: mean-pool (sum-pool * inv_count) + linear head (lane-dense, 128 lanes)
    @pl.when(is_last)
    def _head():
        g = jnp.dot(psum_ref[...], z.astype(bf16),
                    preferred_element_type=jnp.float32) * invc_ref[...]
        out_ref[...] = (jnp.dot(g.astype(bf16), pw_ref[...],
                                preferred_element_type=jnp.float32) + pb_ref[...])


# ----------------------------------------------------------------------------- #
# Wrapper: fold BN, pad to lane/sublane-dense shapes, stack per-layer weights,
#          single fused pallas_call with grid=(num_layer,)
# ----------------------------------------------------------------------------- #
def _rup(x, m):
    return ((x + m - 1) // m) * m


def gnn_forward(params, x_int, A, assign):
    f32, bf16 = jnp.float32, jnp.bfloat16

    D = params["atom_emb"].shape[1]
    H = params["gin"][0]["w1"].shape[1]
    N, G = assign.shape
    L = len(params["gin"])
    C = params["pred_w"].shape[1]

    # lane/sublane-dense padded dims (biggest measured lever on v6e)
    Dp = _rup(D, 128)
    Hp = _rup(H, 128)
    Gp = _rup(G, 8)
    CP = _rup(C, 128)

    def padc(a, cols):          # zero-pad the last (lane) dim
        return jnp.pad(a.astype(f32), [(0, 0)] * (a.ndim - 1) + [(0, cols - a.shape[-1])])

    # AtomEncoder lookup (glue, tiny) + pad emb_dim -> Dp
    h0 = padc(jnp.take(params["atom_emb"], x_int, axis=0), Dp)          # [N, Dp] f32

    # fold eval-mode BN affine + linear bias:  z*scale+shift after (x@w+b)
    #   => w' = w*scale,  b' = b*scale + shift
    def fold(w, b, scale, shift):
        return w * scale, b * scale + shift

    gw1, gw2, vw1, vw2, bh, bd = [], [], [], [], [], []
    for li in range(L):
        g = params["gin"][li]
        w1, b1 = fold(g["w1"], g["b1"], g["bn1_scale"], g["bn1_shift"])
        w2, b2 = fold(g["w2"], g["b2"], g["bn_out_scale"], g["bn_out_shift"])
        gw1.append(jnp.pad(w1, ((0, Dp - D), (0, Hp - H))))
        gw2.append(jnp.pad(w2, ((0, Hp - H), (0, Dp - D))))
        if li < L - 1:
            v = params["vn"][li]
            u1, c1 = fold(v["w1"], v["b1"], v["bn1_scale"], v["bn1_shift"])
            u2, c2 = fold(v["w2"], v["b2"], v["bn2_scale"], v["bn2_shift"])
            vw1.append(jnp.pad(u1, ((0, Dp - D), (0, Hp - H))))
            vw2.append(jnp.pad(u2, ((0, Hp - H), (0, Dp - D))))
        else:
            c1 = jnp.zeros((1, H), f32)     # unused (pl.when-gated) VN biases, last layer
            c2 = jnp.zeros((1, D), f32)
        # pack small per-layer row vectors into two slabs -> fewer DMA descriptors/step
        bh.append(jnp.concatenate([padc(b1, Hp), padc(c1, Hp)], axis=0))               # [2, Hp]
        bd.append(jnp.concatenate([padc(params["edge_emb"][li], Dp),
                                   padc(b2, Dp), padc(c2, Dp)], axis=0))               # [3, Dp]

    gw1 = jnp.stack(gw1).astype(bf16)        # [L,   Dp, Hp]
    gw2 = jnp.stack(gw2).astype(bf16)        # [L,   Hp, Dp]
    vw1 = jnp.stack(vw1).astype(bf16)        # [L-1, Dp, Hp]
    vw2 = jnp.stack(vw2).astype(bf16)        # [L-1, Hp, Dp]
    bh = jnp.stack(bh).astype(f32)           # [L, 2, Hp]
    bd = jnp.stack(bd).astype(f32)           # [L, 3, Dp]

    # fixed (layer-invariant) operands — bf16 MXU operands, pooling from assign only
    a_bf = A.astype(bf16)                                                   # [N, N]
    assign_p = jnp.pad(assign.astype(f32), ((0, 0), (0, Gp - G))).astype(bf16)   # [N, Gp]
    psum_p = jnp.pad(assign.astype(f32).T, ((0, Gp - G), (0, 0))).astype(bf16)   # [Gp, N]
    counts = jnp.pad(assign.astype(f32).sum(axis=0), (0, Gp - G))
    inv_c = jnp.where(counts > 0, 1.0 / jnp.maximum(counts, 1.0), 0.0)
    inv_c = inv_c.reshape(Gp, 1).astype(f32)                                # [Gp, 1]
    pw = jnp.zeros((Dp, CP), f32).at[:D, :C].set(params["pred_w"]).astype(bf16)
    pb = jnp.zeros((1, CP), f32).at[:, :C].set(params["pred_b"])

    fixed_inputs = (h0, a_bf, assign_p, psum_p, inv_c, pw, pb)
    layer_inputs = (gw1, gw2, vw1, vw2, bh, bd)

    # --- specs -------------------------------------------------------------- #
    last_vn = max(L - 2, 0)

    def fixed_spec(a, single_buffer):
        nd = a.ndim
        idx = lambda l, nd=nd: (0,) * nd                     # DMA'd once, then skipped
        if single_buffer:
            return pl.BlockSpec(a.shape, idx, pipeline_mode=pl.Buffered(1))
        return pl.BlockSpec(a.shape, idx)

    def layer_spec(a, clamp_to_vn):
        shape = (None,) + a.shape[1:]
        if clamp_to_vn:
            # last grid step revisits the already-resident VN block -> DMA skipped
            return pl.BlockSpec(shape, lambda l: (jnp.minimum(l, last_vn), 0, 0))
        return pl.BlockSpec(shape, lambda l: (l, 0, 0))

    # --- VMEM budget / cost ------------------------------------------------- #
    def nbytes(a):
        return int(a.size) * a.dtype.itemsize

    footprint = (sum(nbytes(a) for a in fixed_inputs)
                 + 2 * sum(nbytes(a) // a.shape[0] for a in layer_inputs)   # double-buffered
                 + 2 * Gp * CP * 4                                          # output
                 + (N * Dp + Gp * Dp) * 4)                                  # h / vn scratch
    vmem_limit = int(min(max(2 * footprint + (16 << 20), 32 << 20), 60 << 20))

    flops_layer = 2 * (N * Gp * Dp + N * N * Dp + N * Dp * Hp + N * Hp * Dp
                       + Gp * N * Dp + Gp * Dp * Hp + Gp * Hp * Dp)
    cost = pl.CostEstimate(
        flops=int(flops_layer * L + 2 * (Gp * N * Dp + Gp * Dp * CP)),
        transcendentals=0,
        bytes_accessed=int(sum(nbytes(a) for a in fixed_inputs)
                           + sum(nbytes(a) for a in layer_inputs) + Gp * CP * 4),
    )

    kernel = functools.partial(_fused_gnn_kernel, eps=0.0)   # GINConv default eps

    def build(single_buffer_fixed):
        in_specs = ([fixed_spec(a, single_buffer_fixed) for a in fixed_inputs]
                    + [layer_spec(gw1, False), layer_spec(gw2, False),
                       layer_spec(vw1, True), layer_spec(vw2, True),
                       layer_spec(bh, False), layer_spec(bd, False)])
        return pl.pallas_call(
            kernel,
            grid_spec=pltpu.PrefetchScalarGridSpec(
                num_scalar_prefetch=0,
                grid=(L,),
                in_specs=in_specs,
                out_specs=pl.BlockSpec((Gp, CP), lambda l: (0, 0)),   # resident, written last
                scratch_shapes=[pltpu.VMEM((N, Dp), jnp.float32),     # h  (node features)
                                pltpu.VMEM((Gp, Dp), jnp.float32)],   # vn (virtual node)
            ),
            out_shape=jax.ShapeDtypeStruct((Gp, CP), jnp.float32),
            compiler_params=pltpu.CompilerParams(
                dimension_semantics=("arbitrary",),        # layer axis carries state
                vmem_limit_bytes=vmem_limit,
            ),
            cost_estimate=cost,
        )

    args = (*fixed_inputs, *layer_inputs)
    try:
        out_padded = jax.block_until_ready(build(True)(*args))
    except Exception:
        # fallback: default double-buffering if single-buffered invariant inputs unsupported
        out_padded = build(False)(*args)
    return out_padded[:G, :C]


# ----------------------------------------------------------------------------- #
# Parameter init (deterministic synthetic, eval-mode BN folded to affine)
# ----------------------------------------------------------------------------- #
def init_params(key, *, emb_dim, num_layer, num_class, num_atom_types):
    D, H = emb_dim, 2 * emb_dim
    keys = iter(jax.random.split(key, 512))

    def nrm(shape, scale=0.1):
        return (scale * jax.random.normal(next(keys), shape)).astype(jnp.float32)

    def bn(dim):
        gamma = 1.0 + nrm((1, dim), 0.05)
        beta = nrm((1, dim), 0.05)
        mean = nrm((1, dim), 0.05)
        var = 1.0 + jnp.abs(nrm((1, dim), 0.05))
        scale = gamma / jnp.sqrt(var + 1e-5)
        shift = beta - mean * scale
        return scale.astype(jnp.float32), shift.astype(jnp.float32)

    params = {
        "atom_emb": nrm((num_atom_types, D)),
        "edge_emb": nrm((num_layer, 1, D)),
        "pred_w": nrm((D, num_class)),
        "pred_b": nrm((1, num_class)),
        "gin": [],
        "vn": [],
    }
    for _ in range(num_layer):
        s1, t1 = bn(H)
        so, to = bn(D)
        params["gin"].append(dict(
            w1=nrm((D, H)), b1=nrm((1, H)), bn1_scale=s1, bn1_shift=t1,
            w2=nrm((H, D)), b2=nrm((1, D)), bn_out_scale=so, bn_out_shift=to))
    for _ in range(num_layer - 1):
        s1, t1 = bn(H)
        s2, t2 = bn(D)
        params["vn"].append(dict(
            w1=nrm((D, H)), b1=nrm((1, H)), bn1_scale=s1, bn1_shift=t1,
            w2=nrm((H, D)), b2=nrm((1, D)), bn2_scale=s2, bn2_shift=t2))
    return params


def gnn_reference(params, x_int, A, assign, p_sum, p_mean):
    """Pure-JAX f32 reference for correctness check."""
    h = params["atom_emb"][x_int]
    G = assign.shape[1]
    vn = jnp.zeros((G, h.shape[1]), jnp.float32)
    L = len(params["gin"])
    for l in range(L):
        g = params["gin"][l]
        hpost = h + assign @ vn
        msg = jax.nn.relu(hpost + params["edge_emb"][l])
        z = hpost + A @ msg
        z = z @ g["w1"] + g["b1"]
        z = jax.nn.relu(z * g["bn1_scale"] + g["bn1_shift"])
        z = z @ g["w2"] + g["b2"]
        z = z * g["bn_out_scale"] + g["bn_out_shift"]
        if l < L - 1:
            z = jax.nn.relu(z)
            v = params["vn"][l]
            t = (p_sum @ hpost + vn) @ v["w1"] + v["b1"]
            t = jax.nn.relu(t * v["bn1_scale"] + v["bn1_shift"])
            t = t @ v["w2"] + v["b2"]
            vn = jax.nn.relu(t * v["bn2_scale"] + v["bn2_shift"])
        h = z
    return (p_mean @ h) @ params["pred_w"] + params["pred_b"]


# ----------------------------------------------------------------------------- #
if __name__ == "__main__":
    # small shapes: 2 graphs x 8 nodes, emb_dim=32, 5 GNN layers, 4 classes
    N_PER_GRAPH, G = 8, 2
    N = N_PER_GRAPH * G
    EMB_DIM, NUM_LAYER, NUM_CLASS, NUM_ATOM_TYPES = 32, 5, 4, 16

    key = jax.random.PRNGKey(0)
    k_params, k_x = jax.random.split(key)
    params = init_params(k_params, emb_dim=EMB_DIM, num_layer=NUM_LAYER,
                         num_class=NUM_CLASS, num_atom_types=NUM_ATOM_TYPES)

    # node integer features
    x_int = jax.random.randint(k_x, (N,), 0, NUM_ATOM_TYPES, dtype=jnp.int32)

    # dense symmetric adjacency: ring within each graph
    A = jnp.zeros((N, N), jnp.float32)
    for gidx in range(G):
        for i in range(N_PER_GRAPH):
            a = gidx * N_PER_GRAPH + i
            b = gidx * N_PER_GRAPH + (i + 1) % N_PER_GRAPH
            A = A.at[a, b].set(1.0).at[b, a].set(1.0)

    # graph assignment (one-hot node -> graph)
    batch = jnp.concatenate([jnp.full((N_PER_GRAPH,), g, jnp.int32) for g in range(G)])
    assign = jax.nn.one_hot(batch, G, dtype=jnp.float32)        # [N, G]

    out = gnn_forward(params, x_int, A, assign)
    out = jax.block_until_ready(out)

    # f32 reference (kernel uses bf16 MXU operands -> looser tolerance)
    p_sum = assign.T
    p_mean = p_sum / p_sum.sum(axis=1, keepdims=True)
    ref = gnn_reference(params, x_int, A, assign, p_sum, p_mean)

    assert out.shape == (G, NUM_CLASS), out.shape
    assert jnp.allclose(out, ref, atol=5e-2, rtol=5e-2), (out, ref)

    print("KERNEL_OK")
</pallas_src>

<mosaic_0001>
module attributes {stable_mosaic.version = 11 : i64} {
  func.func @_fused_gnn_kernel(%arg0: i32, %arg1: memref<16x128xf32, #tpu.memory_space<vmem>>, %arg2: memref<16x16xbf16, #tpu.memory_space<vmem>>, %arg3: memref<16x8xbf16, #tpu.memory_space<vmem>>, %arg4: memref<8x16xbf16, #tpu.memory_space<vmem>>, %arg5: memref<8x1xf32, #tpu.memory_space<vmem>>, %arg6: memref<128x128xbf16, #tpu.memory_space<vmem>>, %arg7: memref<1x128xf32, #tpu.memory_space<vmem>>, %arg8: memref<1x128x128xbf16, #tpu.memory_space<vmem>>, %arg9: memref<1x128x128xbf16, #tpu.memory_space<vmem>>, %arg10: memref<1x128x128xbf16, #tpu.memory_space<vmem>>, %arg11: memref<1x128x128xbf16, #tpu.memory_space<vmem>>, %arg12: memref<1x2x128xf32, #tpu.memory_space<vmem>>, %arg13: memref<1x3x128xf32, #tpu.memory_space<vmem>>, %arg14: memref<8x128xf32, #tpu.memory_space<vmem>>, %arg15: memref<16x128xf32, #tpu.memory_space<vmem>>, %arg16: memref<8x128xf32, #tpu.memory_space<vmem>>) attributes {dimension_semantics = [#tpu.dimension_semantics<arbitrary>], iteration_bounds = array<i64: 5>, scalar_prefetch = 0 : i64, scratch_operands = 2 : i64, tpu.core_type = #tpu.core_type<tc>, window_params = [{pipeline_mode = #tpu.pipeline_mode<synchronous>, transform_indices = @transform_0, window_bounds = array<i64: 16, 128>}, {pipeline_mode = #tpu.pipeline_mode<synchronous>, transform_indices = @transform_1, window_bounds = array<i64: 16, 16>}, {pipeline_mode = #tpu.pipeline_mode<synchronous>, transform_indices = @transform_2, window_bounds = array<i64: 16, 8>}, {pipeline_mode = #tpu.pipeline_mode<synchronous>, transform_indices = @transform_3, window_bounds = array<i64: 8, 16>}, {pipeline_mode = #tpu.pipeline_mode<synchronous>, transform_indices = @transform_4, window_bounds = array<i64: 8, 1>}, {pipeline_mode = #tpu.pipeline_mode<synchronous>, transform_indices = @transform_5, window_bounds = array<i64: 128, 128>}, {pipeline_mode = #tpu.pipeline_mode<synchronous>, transform_indices = @transform_6, window_bounds = array<i64: 1, 128>}, {transform_indices = @transform_7, window_bounds = array<i64: 1, 128, 128>}, {transform_indices = @transform_8, window_bounds = array<i64: 1, 128, 128>}, {transform_indices = @transform_9, window_bounds = array<i64: 1, 128, 128>}, {transform_indices = @transform_10, window_bounds = array<i64: 1, 128, 128>}, {transform_indices = @transform_11, window_bounds = array<i64: 1, 2, 128>}, {transform_indices = @transform_12, window_bounds = array<i64: 1, 3, 128>}, {pipeline_mode = #tpu.pipeline_mode<synchronous>, transform_indices = @transform_13, window_bounds = array<i64: 8, 128>}]} {
    %c4_i32 = arith.constant 4 : i32
    %0 = arith.cmpi eq, %arg0, %c4_i32 : i32
    %c0_i32 = arith.constant 0 : i32
    %1 = arith.cmpi eq, %arg0, %c0_i32 : i32
    %2 = arith.extui %1 : i1 to i32
    %c0_i32_0 = arith.constant 0 : i32
    %3 = arith.cmpi ne, %2, %c0_i32_0 : i32
    scf.if %3 {
      %c0_29 = arith.constant 0 : index
      %c0_30 = arith.constant 0 : index
      %43 = vector.load %arg1[%c0_29, %c0_30] : memref<16x128xf32, #tpu.memory_space<vmem>>, vector<16x128xf32>
      %c0_31 = arith.constant 0 : index
      %c0_32 = arith.constant 0 : index
      %44 = vector.load %arg15[%c0_31, %c0_32] : memref<16x128xf32, #tpu.memory_space<vmem>>, vector<16x128xf32>
      tpu.vector_store %arg15[%c0_31, %c0_32], %43 {strides = array<i32>} : memref<16x128xf32, #tpu.memory_space<vmem>>, vector<16x128xf32>,
      %cst_33 = arith.constant 0.000000e+00 : f32
      %45 = vector.broadcast %cst_33 : f32 to vector<8x128xf32>
      %c0_34 = arith.constant 0 : index
      %c0_35 = arith.constant 0 : index
      %46 = vector.load %arg16[%c0_34, %c0_35] : memref<8x128xf32, #tpu.memory_space<vmem>>, vector<8x128xf32>
      tpu.vector_store %arg16[%c0_34, %c0_35], %45 {strides = array<i32>} : memref<8x128xf32, #tpu.memory_space<vmem>>, vector<8x128xf32>,
    } else {
    }
    %c0 = arith.constant 0 : index
    %c0_1 = arith.constant 0 : index
    %4 = vector.load %arg15[%c0, %c0_1] : memref<16x128xf32, #tpu.memory_space<vmem>>, vector<16x128xf32>
    %c0_2 = arith.constant 0 : index
    %c0_3 = arith.constant 0 : index
    %5 = vector.load %arg16[%c0_2, %c0_3] : memref<8x128xf32, #tpu.memory_space<vmem>>, vector<8x128xf32>
    %c0_4 = arith.constant 0 : index
    %c0_5 = arith.constant 0 : index
    %6 = vector.load %arg3[%c0_4, %c0_5] : memref<16x8xbf16, #tpu.memory_space<vmem>>, vector<16x8xbf16>
    %7 = arith.truncf %5 : vector<8x128xf32> to vector<8x128xbf16>
    %cst = arith.constant dense<0.000000e+00> : vector<16x128xf32>
    %8 = tpu.matmul %6, %7, %cst {dimension_numbers = #tpu.dot_dimension_numbers<[1], [0], [0], [1], [0, 0, 1, 1], [], []>} : vector<16x8xbf16>, vector<8x128xbf16>, vector<16x128xf32> -> vector<16x128xf32>
    %9 = arith.addf %4, %8 : vector<16x128xf32>
    %c0_6 = arith.constant 0 : index
    %c0_7 = arith.constant 0 : index
    %c0_8 = arith.constant 0 : index
    %10 = vector.load %arg13[%c0_6, %c0_7, %c0_8] : memref<1x3x128xf32, #tpu.memory_space<vmem>>, vector<1x1x128xf32>
    %11 = vector.shape_cast %10 : vector<1x1x128xf32> to vector<1x128xf32>
    %12 = vector.broadcast %11 : vector<1x128xf32> to vector<16x128xf32>
    %13 = arith.addf %9, %12 : vector<16x128xf32>
    %cst_9 = arith.constant 0.000000e+00 : f32
    %14 = vector.broadcast %cst_9 : f32 to vector<16x128xf32>
    %15 = arith.maximumf %13, %14 : vector<16x128xf32>
    %c0_10 = arith.constant 0 : index
    %c0_11 = arith.constant 0 : index
    %16 = vector.load %arg2[%c0_10, %c0_11] : memref<16x16xbf16, #tpu.memory_space<vmem>>, vector<16x16xbf16>
    %17 = arith.truncf %15 : vector<16x128xf32> to vector<16x128xbf16>
    %cst_12 = arith.constant dense<0.000000e+00> : vector<16x128xf32>
    %18 = tpu.matmul %16, %17, %cst_12 {dimension_numbers = #tpu.dot_dimension_numbers<[1], [0], [0], [1], [0, 0, 1, 1], [], []>} : vector<16x16xbf16>, vector<16x128xbf16>, vector<16x128xf32> -> vector<16x128xf32>
    %19 = arith.addf %9, %18 : vector<16x128xf32>
    %20 = arith.truncf %19 : vector<16x128xf32> to vector<16x128xbf16>
    %c0_13 = arith.constant 0 : index
    %c0_14 = arith.constant 0 : index
    %c0_15 = arith.constant 0 : index
    %21 = vector.load %arg8[%c0_13, %c0_14, %c0_15] : memref<1x128x128xbf16, #tpu.memory_space<vmem>>, vector<1x128x128xbf16>
    %22 = vector.shape_cast %21 : vector<1x128x128xbf16> to vector<128x128xbf16>
    %cst_16 = arith.constant dense<0.000000e+00> : vector<16x128xf32>
    %23 = tpu.matmul %20, %22, %cst_16 {dimension_numbers = #tpu.dot_dimension_numbers<[1], [0], [0], [1], [0, 0, 1, 1], [], []>} : vector<16x128xbf16>, vector<128x128xbf16>, vector<16x128xf32> -> vector<16x128xf32>
    %c0_17 = arith.constant 0 : index
    %c0_18 = arith.constant 0 : index
    %c0_19 = arith.constant 0 : index
    %24 = vector.load %arg12[%c0_17, %c0_18, %c0_19] : memref<1x2x128xf32, #tpu.memory_space<vmem>>, vector<1x1x128xf32>
    %25 = vector.shape_cast %24 : vector<1x1x128xf32> to vector<1x128xf32>
    %26 = vector.broadcast %25 : vector<1x128xf32> to vector<16x128xf32>
    %27 = arith.addf %23, %26 : vector<16x128xf32>
    %cst_20 = arith.constant 0.000000e+00 : f32
    %28 = vector.broadcast %cst_20 : f32 to vector<16x128xf32>
    %29 = arith.maximumf %27, %28 : vector<16x128xf32>
    %30 = arith.truncf %29 : vector<16x128xf32> to vector<16x128xbf16>
    %c0_21 = arith.constant 0 : index
    %c0_22 = arith.constant 0 : index
    %c0_23 = arith.constant 0 : index
    %31 = vector.load %arg9[%c0_21, %c0_22, %c0_23] : memref<1x128x128xbf16, #tpu.memory_space<vmem>>, vector<1x128x128xbf16>
    %32 = vector.shape_cast %31 : vector<1x128x128xbf16> to vector<128x128xbf16>
    %cst_24 = arith.constant dense<0.000000e+00> : vector<16x128xf32>
    %33 = tpu.matmul %30, %32, %cst_24 {dimension_numbers = #tpu.dot_dimension_numbers<[1], [0], [0], [1], [0, 0, 1, 1], [], []>} : vector<16x128xbf16>, vector<128x128xbf16>, vector<16x128xf32> -> vector<16x128xf32>
    %c0_25 = arith.constant 0 : index
    %c1 = arith.constant 1 : index
    %c0_26 = arith.constant 0 : index
    %34 = vector.load %arg13[%c0_25, %c1, %c0_26] : memref<1x3x128xf32, #tpu.memory_space<vmem>>, vector<1x1x128xf32>
    %35 = vector.shape_cast %34 : vector<1x1x128xf32> to vector<1x128xf32>
    %36 = vector.broadcast %35 : vector<1x128xf32> to vector<16x128xf32>
    %37 = arith.addf %33, %36 : vector<16x128xf32>
    %true = arith.constant true
    %38 = arith.xori %0, %true : i1
    %39 = arith.extui %38 : i1 to i32
    %c0_i32_27 = arith.constant 0 : i32
    %40 = arith.cmpi ne, %39, %c0_i32_27 : i32
    scf.if %40 {
      %cst_29 = arith.constant 0.000000e+00 : f32
      %43 = vector.broadcast %cst_29 : f32 to vector<16x128xf32>
      %44 = arith.maximumf %37, %43 : vector<16x128xf32>
      %c0_30 = arith.constant 0 : index
      %c0_31 = arith.constant 0 : index
      %45 = vector.load %arg15[%c0_30, %c0_31] : memref<16x128xf32, #tpu.memory_space<vmem>>, vector<16x128xf32>
      tpu.vector_store %arg15[%c0_30, %c0_31], %44 {strides = array<i32>} : memref<16x128xf32, #tpu.memory_space<vmem>>, vector<16x128xf32>,
      %c0_32 = arith.constant 0 : index
      %c0_33 = arith.constant 0 : index
      %46 = vector.load %arg4[%c0_32, %c0_33] : memref<8x16xbf16, #tpu.memory_space<vmem>>, vector<8x16xbf16>
      %47 = arith.truncf %9 : vector<16x128xf32> to vector<16x128xbf16>
      %cst_34 = arith.constant dense<0.000000e+00> : vector<8x128xf32>
      %48 = tpu.matmul %46, %47, %cst_34 {dimension_numbers = #tpu.dot_dimension_numbers<[1], [0], [0], [1], [0, 0, 1, 1], [], []>} : vector<8x16xbf16>, vector<16x128xbf16>, vector<8x128xf32> -> vector<8x128xf32>
      %49 = arith.addf %48, %5 : vector<8x128xf32>
      %50 = arith.truncf %49 : vector<8x128xf32> to vector<8x128xbf16>
      %c0_35 = arith.constant 0 : index
      %c0_36 = arith.constant 0 : index
      %c0_37 = arith.constant 0 : index
      %51 = vector.load %arg10[%c0_35, %c0_36, %c0_37] : memref<1x128x128xbf16, #tpu.memory_space<vmem>>, vector<1x128x128xbf16>
      %52 = vector.shape_cast %51 : vector<1x128x128xbf16> to vector<128x128xbf16>
      %cst_38 = arith.constant dense<0.000000e+00> : vector<8x128xf32>
      %53 = tpu.matmul %50, %52, %cst_38 {dimension_numbers = #tpu.dot_dimension_numbers<[1], [0], [0], [1], [0, 0, 1, 1], [], []>} : vector<8x128xbf16>, vector<128x128xbf16>, vector<8x128xf32> -> vector<8x128xf32>
      %c0_39 = arith.constant 0 : index
      %c1_40 = arith.constant 1 : index
      %c0_41 = arith.constant 0 : index
      %54 = vector.load %arg12[%c0_39, %c1_40, %c0_41] : memref<1x2x128xf32, #tpu.memory_space<vmem>>, vector<1x1x128xf32>
      %55 = vector.shape_cast %54 : vector<1x1x128xf32> to vector<1x128xf32>
      %56 = vector.broadcast %55 : vector<1x128xf32> to vector<8x128xf32>
      %57 = arith.addf %53, %56 : vector<8x128xf32>
      %cst_42 = arith.constant 0.000000e+00 : f32
      %58 = vector.broadcast %cst_42 : f32 to vector<8x128xf32>
      %59 = arith.maximumf %57, %58 : vector<8x128xf32>
      %60 = arith.truncf %59 : vector<8x128xf32> to vector<8x128xbf16>
      %c0_43 = arith.constant 0 : index
      %c0_44 = arith.constant 0 : index
      %c0_45 = arith.constant 0 : index
      %61 = vector.load %arg11[%c0_43, %c0_44, %c0_45] : memref<1x128x128xbf16, #tpu.memory_space<vmem>>, vector<1x128x128xbf16>
      %62 = vector.shape_cast %61 : vector<1x128x128xbf16> to vector<128x128xbf16>
      %cst_46 = arith.constant dense<0.000000e+00> : vector<8x128xf32>
      %63 = tpu.matmul %60, %62, %cst_46 {dimension_numbers = #tpu.dot_dimension_numbers<[1], [0], [0], [1], [0, 0, 1, 1], [], []>} : vector<8x128xbf16>, vector<128x128xbf16>, vector<8x128xf32> -> vector<8x128xf32>
      %c0_47 = arith.constant 0 : index
      %c2 = arith.constant 2 : index
      %c0_48 = arith.constant 0 : index
      %64 = vector.load %arg13[%c0_47, %c2, %c0_48] : memref<1x3x128xf32, #tpu.memory_space<vmem>>, vector<1x1x128xf32>
      %65 = vector.shape_cast %64 : vector<1x1x128xf32> to vector<1x128xf32>
      %66 = vector.broadcast %65 : vector<1x128xf32> to vector<8x128xf32>
      %67 = arith.addf %63, %66 : vector<8x128xf32>
      %cst_49 = arith.constant 0.000000e+00 : f32
      %68 = vector.broadcast %cst_49 : f32 to vector<8x128xf32>
      %69 = arith.maximumf %67, %68 : vector<8x128xf32>
      %c0_50 = arith.constant 0 : index
      %c0_51 = arith.constant 0 : index
      %70 = vector.load %arg16[%c0_50, %c0_51] : memref<8x128xf32, #tpu.memory_space<vmem>>, vector<8x128xf32>
      tpu.vector_store %arg16[%c0_50, %c0_51], %69 {strides = array<i32>} : memref<8x128xf32, #tpu.memory_space<vmem>>, vector<8x128xf32>,
    } else {
    }
    %41 = arith.extui %0 : i1 to i32
    %c0_i32_28 = arith.constant 0 : i32
    %42 = arith.cmpi ne, %41, %c0_i32_28 : i32
    scf.if %42 {
      %c0_29 = arith.constant 0 : index
      %c0_30 = arith.constant 0 : index
      %43 = vector.load %arg4[%c0_29, %c0_30] : memref<8x16xbf16, #tpu.memory_space<vmem>>, vector<8x16xbf16>
      %44 = arith.truncf %37 : vector<16x128xf32> to vector<16x128xbf16>
      %cst_31 = arith.constant dense<0.000000e+00> : vector<8x128xf32>
      %45 = tpu.matmul %43, %44, %cst_31 {dimension_numbers = #tpu.dot_dimension_numbers<[1], [0], [0], [1], [0, 0, 1, 1], [], []>} : vector<8x16xbf16>, vector<16x128xbf16>, vector<8x128xf32> -> vector<8x128xf32>
      %c0_32 = arith.constant 0 : index
      %c0_33 = arith.constant 0 : index
      %46 = vector.load %arg5[%c0_32, %c0_33] : memref<8x1xf32, #tpu.memory_space<vmem>>, vector<8x1xf32>
      %47 = vector.broadcast %46 : vector<8x1xf32> to vector<8x128xf32>
      %48 = arith.mulf %45, %47 : vector<8x128xf32>
      %49 = arith.truncf %48 : vector<8x128xf32> to vector<8x128xbf16>
      %c0_34 = arith.constant 0 : index
      %c0_35 = arith.constant 0 : index
      %50 = vector.load %arg6[%c0_34, %c0_35] : memref<128x128xbf16, #tpu.memory_space<vmem>>, vector<128x128xbf16>
      %cst_36 = arith.constant dense<0.000000e+00> : vector<8x128xf32>
      %51 = tpu.matmul %49, %50, %cst_36 {dimension_numbers = #tpu.dot_dimension_numbers<[1], [0], [0], [1], [0, 0, 1, 1], [], []>} : vector<8x128xbf16>, vector<128x128xbf16>, vector<8x128xf32> -> vector<8x128xf32>
      %c0_37 = arith.constant 0 : index
      %c0_38 = arith.constant 0 : index
      %52 = vector.load %arg7[%c0_37, %c0_38] : memref<1x128xf32, #tpu.memory_space<vmem>>, vector<1x128xf32>
      %53 = vector.broadcast %52 : vector<1x128xf32> to vector<8x128xf32>
      %54 = arith.addf %51, %53 : vector<8x128xf32>
      %c0_39 = arith.constant 0 : index
      %c0_40 = arith.constant 0 : index
      %55 = vector.load %arg14[%c0_39, %c0_40] : memref<8x128xf32, #tpu.memory_space<vmem>>, vector<8x128xf32>
      tpu.vector_store %arg14[%c0_39, %c0_40], %54 {strides = array<i32>} : memref<8x128xf32, #tpu.memory_space<vmem>>, vector<8x128xf32>,
    } else {
    }
    return
  }
  func.func @transform_0(%arg0: i32) -> (i32, i32) {
    %c0_i32 = arith.constant 0 : i32
    %c0_i32_0 = arith.constant 0 : i32
    %c0_i32_1 = arith.constant 0 : i32
    return %c0_i32, %c0_i32_0 : i32, i32
  }
  func.func @transform_1(%arg0: i32) -> (i32, i32) {
    %c0_i32 = arith.constant 0 : i32
    %c0_i32_0 = arith.constant 0 : i32
    %c0_i32_1 = arith.constant 0 : i32
    return %c0_i32, %c0_i32_0 : i32, i32
  }
  func.func @transform_2(%arg0: i32) -> (i32, i32) {
    %c0_i32 = arith.constant 0 : i32
    %c0_i32_0 = arith.constant 0 : i32
    %c0_i32_1 = arith.constant 0 : i32
    return %c0_i32, %c0_i32_0 : i32, i32
  }
  func.func @transform_3(%arg0: i32) -> (i32, i32) {
    %c0_i32 = arith.constant 0 : i32
    %c0_i32_0 = arith.constant 0 : i32
    %c0_i32_1 = arith.constant 0 : i32
    return %c0_i32, %c0_i32_0 : i32, i32
  }
  func.func @transform_4(%arg0: i32) -> (i32, i32) {
    %c0_i32 = arith.constant 0 : i32
    %c0_i32_0 = arith.constant 0 : i32
    %c0_i32_1 = arith.constant 0 : i32
    return %c0_i32, %c0_i32_0 : i32, i32
  }
  func.func @transform_5(%arg0: i32) -> (i32, i32) {
    %c0_i32 = arith.constant 0 : i32
    %c0_i32_0 = arith.constant 0 : i32
    %c0_i32_1 = arith.constant 0 : i32
    return %c0_i32, %c0_i32_0 : i32, i32
  }
  func.func @transform_6(%arg0: i32) -> (i32, i32) {
    %c0_i32 = arith.constant 0 : i32
    %c0_i32_0 = arith.constant 0 : i32
    %c0_i32_1 = arith.constant 0 : i32
    return %c0_i32, %c0_i32_0 : i32, i32
  }
  func.func @transform_7(%arg0: i32) -> (i32, i32, i32) {
    %c0_i32 = arith.constant 0 : i32
    %c0_i32_0 = arith.constant 0 : i32
    %c0_i32_1 = arith.constant 0 : i32
    return %arg0, %c0_i32, %c0_i32_0 : i32, i32, i32
  }
  func.func @transform_8(%arg0: i32) -> (i32, i32, i32) {
    %c0_i32 = arith.constant 0 : i32
    %c0_i32_0 = arith.constant 0 : i32
    %c0_i32_1 = arith.constant 0 : i32
    return %arg0, %c0_i32, %c0_i32_0 : i32, i32, i32
  }
  func.func @transform_9(%arg0: i32) -> (i32, i32, i32) {
    %c3_i32 = arith.constant 3 : i32
    %0 = arith.minsi %arg0, %c3_i32 : i32
    %c0_i32 = arith.constant 0 : i32
    %c0_i32_0 = arith.constant 0 : i32
    %c0_i32_1 = arith.constant 0 : i32
    return %0, %c0_i32, %c0_i32_0 : i32, i32, i32
  }
  func.func @transform_10(%arg0: i32) -> (i32, i32, i32) {
    %c3_i32 = arith.constant 3 : i32
    %0 = arith.minsi %arg0, %c3_i32 : i32
    %c0_i32 = arith.constant 0 : i32
    %c0_i32_0 = arith.constant 0 : i32
    %c0_i32_1 = arith.constant 0 : i32
    return %0, %c0_i32, %c0_i32_0 : i32, i32, i32
  }
  func.func @transform_11(%arg0: i32) -> (i32, i32, i32) {
    %c0_i32 = arith.constant 0 : i32
    %c0_i32_0 = arith.constant 0 : i32
    %c0_i32_1 = arith.constant 0 : i32
    return %arg0, %c0_i32, %c0_i32_0 : i32, i32, i32
  }
  func.func @transform_12(%arg0: i32) -> (i32, i32, i32) {
    %c0_i32 = arith.constant 0 : i32
    %c0_i32_0 = arith.constant 0 : i32
    %c0_i32_1 = arith.constant 0 : i32
    return %arg0, %c0_i32, %c0_i32_0 : i32, i32, i32
  }
  func.func @transform_13(%arg0: i32) -> (i32, i32) {
    %c0_i32 = arith.constant 0 : i32
    %c0_i32_0 = arith.constant 0 : i32
    %c0_i32_1 = arith.constant 0 : i32
    return %c0_i32, %c0_i32_0 : i32, i32
  }
}

module attributes {stable_mosaic.version = 11 : i64} {
  func.func @_fused_gnn_kernel(%arg0: i32, %arg1: memref<16x128xf32, #tpu.memory_space<vmem>>, %arg2: memref<16x16xbf16, #tpu.memory_space<vmem>>, %arg3: memref<16x8xbf16, #tpu.memory_space<vmem>>, %arg4: memref<8x16xbf16, #tpu.memory_space<vmem>>, %arg5: memref<8x1xf32, #tpu.memory_space<vmem>>, %arg6: memref<128x128xbf16, #tpu.memory_space<vmem>>, %arg7: memref<1x128xf32, #tpu.memory_space<vmem>>, %arg8: memref<1x128x128xbf16, #tpu.memory_space<vmem>>, %arg9: memref<1x128x128xbf16, #tpu.memory_space<vmem>>, %arg10: memref<1x128x128xbf16, #tpu.memory_space<vmem>>, %arg11: memref<1x128x128xbf16, #tpu.memory_space<vmem>>, %arg12: memref<1x2x128xf32, #tpu.memory_space<vmem>>, %arg13: memref<1x3x128xf32, #tpu.memory_space<vmem>>, %arg14: memref<8x128xf32, #tpu.memory_space<vmem>>, %arg15: memref<16x128xf32, #tpu.memory_space<vmem>>, %arg16: memref<8x128xf32, #tpu.memory_space<vmem>>) attributes {dimension_semantics = [#tpu.dimension_semantics<arbitrary>], iteration_bounds = array<i64: 5>, scalar_prefetch = 0 : i64, scratch_operands = 2 : i64, tpu.core_type = #tpu.core_type<tc>, window_params = [{pipeline_mode = #tpu.pipeline_mode<synchronous>, transform_indices = @transform_0, window_bounds = array<i64: 16, 128>}, {pipeline_mode = #tpu.pipeline_mode<synchronous>, transform_indices = @transform_1, window_bounds = array<i64: 16, 16>}, {pipeline_mode = #tpu.pipeline_mode<synchronous>, transform_indices = @transform_2, window_bounds = array<i64: 16, 8>}, {pipeline_mode = #tpu.pipeline_mode<synchronous>, transform_indices = @transform_3, window_bounds = array<i64: 8, 16>}, {pipeline_mode = #tpu.pipeline_mode<synchronous>, transform_indices = @transform_4, window_bounds = array<i64: 8, 1>}, {pipeline_mode = #tpu.pipeline_mode<synchronous>, transform_indices = @transform_5, window_bounds = array<i64: 128, 128>}, {pipeline_mode = #tpu.pipeline_mode<synchronous>, transform_indices = @transform_6, window_bounds = array<i64: 1, 128>}, {transform_indices = @transform_7, window_bounds = array<i64: 1, 128, 128>}, {transform_indices = @transform_8, window_bounds = array<i64: 1, 128, 128>}, {transform_indices = @transform_9, window_bounds = array<i64: 1, 128, 128>}, {transform_indices = @transform_10, window_bounds = array<i64: 1, 128, 128>}, {transform_indices = @transform_11, window_bounds = array<i64: 1, 2, 128>}, {transform_indices = @transform_12, window_bounds = array<i64: 1, 3, 128>}, {pipeline_mode = #tpu.pipeline_mode<synchronous>, transform_indices = @transform_13, window_bounds = array<i64: 8, 128>}]} {
    %c4_i32 = arith.constant 4 : i32
    %0 = arith.cmpi eq, %arg0, %c4_i32 : i32
    %c0_i32 = arith.constant 0 : i32
    %1 = arith.cmpi eq, %arg0, %c0_i32 : i32
    %2 = arith.extui %1 : i1 to i32
    %c0_i32_0 = arith.constant 0 : i32
    %3 = arith.cmpi ne, %2, %c0_i32_0 : i32
    scf.if %3 {
      %c0_29 = arith.constant 0 : index
      %c0_30 = arith.constant 0 : index
      %43 = vector.load %arg1[%c0_29, %c0_30] : memref<16x128xf32, #tpu.memory_space<vmem>>, vector<16x128xf32>
      %c0_31 = arith.constant 0 : index
      %c0_32 = arith.constant 0 : index
      %44 = vector.load %arg15[%c0_31, %c0_32] : memref<16x128xf32, #tpu.memory_space<vmem>>, vector<16x128xf32>
      tpu.vector_store %arg15[%c0_31, %c0_32], %43 {strides = array<i32>} : memref<16x128xf32, #tpu.memory_space<vmem>>, vector<16x128xf32>,
      %cst_33 = arith.constant 0.000000e+00 : f32
      %45 = vector.broadcast %cst_33 : f32 to vector<8x128xf32>
      %c0_34 = arith.constant 0 : index
      %c0_35 = arith.constant 0 : index
      %46 = vector.load %arg16[%c0_34, %c0_35] : memref<8x128xf32, #tpu.memory_space<vmem>>, vector<8x128xf32>
      tpu.vector_store %arg16[%c0_34, %c0_35], %45 {strides = array<i32>} : memref<8x128xf32, #tpu.memory_space<vmem>>, vector<8x128xf32>,
    } else {
    }
    %c0 = arith.constant 0 : index
    %c0_1 = arith.constant 0 : index
    %4 = vector.load %arg15[%c0, %c0_1] : memref<16x128xf32, #tpu.memory_space<vmem>>, vector<16x128xf32>
    %c0_2 = arith.constant 0 : index
    %c0_3 = arith.constant 0 : index
    %5 = vector.load %arg16[%c0_2, %c0_3] : memref<8x128xf32, #tpu.memory_space<vmem>>, vector<8x128xf32>
    %c0_4 = arith.constant 0 : index
    %c0_5 = arith.constant 0 : index
    %6 = vector.load %arg3[%c0_4, %c0_5] : memref<16x8xbf16, #tpu.memory_space<vmem>>, vector<16x8xbf16>
    %7 = arith.truncf %5 : vector<8x128xf32> to vector<8x128xbf16>
    %cst = arith.constant dense<0.000000e+00> : vector<16x128xf32>
    %8 = tpu.matmul %6, %7, %cst {dimension_numbers = #tpu.dot_dimension_numbers<[1], [0], [0], [1], [0, 0, 1, 1], [], []>} : vector<16x8xbf16>, vector<8x128xbf16>, vector<16x128xf32> -> vector<16x128xf32>
    %9 = arith.addf %4, %8 : vector<16x128xf32>
    %c0_6 = arith.constant 0 : index
    %c0_7 = arith.constant 0 : index
    %c0_8 = arith.constant 0 : index
    %10 = vector.load %arg13[%c0_6, %c0_7, %c0_8] : memref<1x3x128xf32, #tpu.memory_space<vmem>>, vector<1x1x128xf32>
    %11 = vector.shape_cast %10 : vector<1x1x128xf32> to vector<1x128xf32>
    %12 = vector.broadcast %11 : vector<1x128xf32> to vector<16x128xf32>
    %13 = arith.addf %9, %12 : vector<16x128xf32>
    %cst_9 = arith.constant 0.000000e+00 : f32
    %14 = vector.broadcast %cst_9 : f32 to vector<16x128xf32>
    %15 = arith.maximumf %13, %14 : vector<16x128xf32>
    %c0_10 = arith.constant 0 : index
    %c0_11 = arith.constant 0 : index
    %16 = vector.load %arg2[%c0_10, %c0_11] : memref<16x16xbf16, #tpu.memory_space<vmem>>, vector<16x16xbf16>
    %17 = arith.truncf %15 : vector<16x128xf32> to vector<16x128xbf16>
    %cst_12 = arith.constant dense<0.000000e+00> : vector<16x128xf32>
    %18 = tpu.matmul %16, %17, %cst_12 {dimension_numbers = #tpu.dot_dimension_numbers<[1], [0], [0], [1], [0, 0, 1, 1], [], []>} : vector<16x16xbf16>, vector<16x128xbf16>, vector<16x128xf32> -> vector<16x128xf32>
    %19 = arith.addf %9, %18 : vector<16x128xf32>
    %20 = arith.truncf %19 : vector<16x128xf32> to vector<16x128xbf16>
    %c0_13 = arith.constant 0 : index
    %c0_14 = arith.constant 0 : index
    %c0_15 = arith.constant 0 : index
    %21 = vector.load %arg8[%c0_13, %c0_14, %c0_15] : memref<1x128x128xbf16, #tpu.memory_space<vmem>>, vector<1x128x128xbf16>
    %22 = vector.shape_cast %21 : vector<1x128x128xbf16> to vector<128x128xbf16>
    %cst_16 = arith.constant dense<0.000000e+00> : vector<16x128xf32>
    %23 = tpu.matmul %20, %22, %cst_16 {dimension_numbers = #tpu.dot_dimension_numbers<[1], [0], [0], [1], [0, 0, 1, 1], [], []>} : vector<16x128xbf16>, vector<128x128xbf16>, vector<16x128xf32> -> vector<16x128xf32>
    %c0_17 = arith.constant 0 : index
    %c0_18 = arith.constant 0 : index
    %c0_19 = arith.constant 0 : index
    %24 = vector.load %arg12[%c0_17, %c0_18, %c0_19] : memref<1x2x128xf32, #tpu.memory_space<vmem>>, vector<1x1x128xf32>
    %25 = vector.shape_cast %24 : vector<1x1x128xf32> to vector<1x128xf32>
    %26 = vector.broadcast %25 : vector<1x128xf32> to vector<16x128xf32>
    %27 = arith.addf %23, %26 : vector<16x128xf32>
    %cst_20 = arith.constant 0.000000e+00 : f32
    %28 = vector.broadcast %cst_20 : f32 to vector<16x128xf32>
    %29 = arith.maximumf %27, %28 : vector<16x128xf32>
    %30 = arith.truncf %29 : vector<16x128xf32> to vector<16x128xbf16>
    %c0_21 = arith.constant 0 : index
    %c0_22 = arith.constant 0 : index
    %c0_23 = arith.constant 0 : index
    %31 = vector.load %arg9[%c0_21, %c0_22, %c0_23] : memref<1x128x128xbf16, #tpu.memory_space<vmem>>, vector<1x128x128xbf16>
    %32 = vector.shape_cast %31 : vector<1x128x128xbf16> to vector<128x128xbf16>
    %cst_24 = arith.constant dense<0.000000e+00> : vector<16x128xf32>
    %33 = tpu.matmul %30, %32, %cst_24 {dimension_numbers = #tpu.dot_dimension_numbers<[1], [0], [0], [1], [0, 0, 1, 1], [], []>} : vector<16x128xbf16>, vector<128x128xbf16>, vector<16x128xf32> -> vector<16x128xf32>
    %c0_25 = arith.constant 0 : index
    %c1 = arith.constant 1 : index
    %c0_26 = arith.constant 0 : index
    %34 = vector.load %arg13[%c0_25, %c1, %c0_26] : memref<1x3x128xf32, #tpu.memory_space<vmem>>, vector<1x1x128xf32>
    %35 = vector.shape_cast %34 : vector<1x1x128xf32> to vector<1x128xf32>
    %36 = vector.broadcast %35 : vector<1x128xf32> to vector<16x128xf32>
    %37 = arith.addf %33, %36 : vector<16x128xf32>
    %true = arith.constant true
    %38 = arith.xori %0, %true : i1
    %39 = arith.extui %38 : i1 to i32
    %c0_i32_27 = arith.constant 0 : i32
    %40 = arith.cmpi ne, %39, %c0_i32_27 : i32
    scf.if %40 {
      %cst_29 = arith.constant 0.000000e+00 : f32
      %43 = vector.broadcast %cst_29 : f32 to vector<16x128xf32>
      %44 = arith.maximumf %37, %43 : vector<16x128xf32>
      %c0_30 = arith.constant 0 : index
      %c0_31 = arith.constant 0 : index
      %45 = vector.load %arg15[%c0_30, %c0_31] : memref<16x128xf32, #tpu.memory_space<vmem>>, vector<16x128xf32>
      tpu.vector_store %arg15[%c0_30, %c0_31], %44 {strides = array<i32>} : memref<16x128xf32, #tpu.memory_space<vmem>>, vector<16x128xf32>,
      %c0_32 = arith.constant 0 : index
      %c0_33 = arith.constant 0 : index
      %46 = vector.load %arg4[%c0_32, %c0_33] : memref<8x16xbf16, #tpu.memory_space<vmem>>, vector<8x16xbf16>
      %47 = arith.truncf %9 : vector<16x128xf32> to vector<16x128xbf16>
      %cst_34 = arith.constant dense<0.000000e+00> : vector<8x128xf32>
      %48 = tpu.matmul %46, %47, %cst_34 {dimension_numbers = #tpu.dot_dimension_numbers<[1], [0], [0], [1], [0, 0, 1, 1], [], []>} : vector<8x16xbf16>, vector<16x128xbf16>, vector<8x128xf32> -> vector<8x128xf32>
      %49 = arith.addf %48, %5 : vector<8x128xf32>
      %50 = arith.truncf %49 : vector<8x128xf32> to vector<8x128xbf16>
      %c0_35 = arith.constant 0 : index
      %c0_36 = arith.constant 0 : index
      %c0_37 = arith.constant 0 : index
      %51 = vector.load %arg10[%c0_35, %c0_36, %c0_37] : memref<1x128x128xbf16, #tpu.memory_space<vmem>>, vector<1x128x128xbf16>
      %52 = vector.shape_cast %51 : vector<1x128x128xbf16> to vector<128x128xbf16>
      %cst_38 = arith.constant dense<0.000000e+00> : vector<8x128xf32>
      %53 = tpu.matmul %50, %52, %cst_38 {dimension_numbers = #tpu.dot_dimension_numbers<[1], [0], [0], [1], [0, 0, 1, 1], [], []>} : vector<8x128xbf16>, vector<128x128xbf16>, vector<8x128xf32> -> vector<8x128xf32>
      %c0_39 = arith.constant 0 : index
      %c1_40 = arith.constant 1 : index
      %c0_41 = arith.constant 0 : index
      %54 = vector.load %arg12[%c0_39, %c1_40, %c0_41] : memref<1x2x128xf32, #tpu.memory_space<vmem>>, vector<1x1x128xf32>
      %55 = vector.shape_cast %54 : vector<1x1x128xf32> to vector<1x128xf32>
      %56 = vector.broadcast %55 : vector<1x128xf32> to vector<8x128xf32>
      %57 = arith.addf %53, %56 : vector<8x128xf32>
      %cst_42 = arith.constant 0.000000e+00 : f32
      %58 = vector.broadcast %cst_42 : f32 to vector<8x128xf32>
      %59 = arith.maximumf %57, %58 : vector<8x128xf32>
      %60 = arith.truncf %59 : vector<8x128xf32> to vector<8x128xbf16>
      %c0_43 = arith.constant 0 : index
      %c0_44 = arith.constant 0 : index
      %c0_45 = arith.constant 0 : index
      %61 = vector.load %arg11[%c0_43, %c0_44, %c0_45] : memref<1x128x128xbf16, #tpu.memory_space<vmem>>, vector<1x128x128xbf16>
      %62 = vector.shape_cast %61 : vector<1x128x128xbf16> to vector<128x128xbf16>
      %cst_46 = arith.constant dense<0.000000e+00> : vector<8x128xf32>
      %63 = tpu.matmul %60, %62, %cst_46 {dimension_numbers = #tpu.dot_dimension_numbers<[1], [0], [0], [1], [0, 0, 1, 1], [], []>} : vector<8x128xbf16>, vector<128x128xbf16>, vector<8x128xf32> -> vector<8x128xf32>
      %c0_47 = arith.constant 0 : index
      %c2 = arith.constant 2 : index
      %c0_48 = arith.constant 0 : index
      %64 = vector.load %arg13[%c0_47, %c2, %c0_48] : memref<1x3x128xf32, #tpu.memory_space<vmem>>, vector<1x1x128xf32>
      %65 = vector.shape_cast %64 : vector<1x1x128xf32> to vector<1x128xf32>
      %66 = vector.broadcast %65 : vector<1x128xf32> to vector<8x128xf32>
      %67 = arith.addf %63, %66 : vector<8x128xf32>
      %cst_49 = arith.constant 0.000000e+00 : f32
      %68 = vector.broadcast %cst_49 : f32 to vector<8x128xf32>
      %69 = arith.maximumf %67, %68 : vector<8x128xf32>
      %c0_50 = arith.constant 0 : index
      %c0_51 = arith.constant 0 : index
      %70 = vector.load %arg16[%c0_50, %c0_51] : memref<8x128xf32, #tpu.memory_space<vmem>>, vector<8x128xf32>
      tpu.vector_store %arg16[%c0_50, %c0_51], %69 {strides = array<i32>} : memref<8x128xf32, #tpu.memory_space<vmem>>, vector<8x128xf32>,
    } else {
    }
    %41 = arith.extui %0 : i1 to i32
    %c0_i32_28 = arith.constant 0 : i32
    %42 = arith.cmpi ne, %41, %c0_i32_28 : i32
    scf.if %42 {
      %c0_29 = arith.constant 0 : index
      %c0_30 = arith.constant 0 : index
      %43 = vector.load %arg4[%c0_29, %c0_30] : memref<8x16xbf16, #tpu.memory_space<vmem>>, vector<8x16xbf16>
      %44 = arith.truncf %37 : vector<16x128xf32> to vector<16x128xbf16>
      %cst_31 = arith.constant dense<0.000000e+00> : vector<8x128xf32>
      %45 = tpu.matmul %43, %44, %cst_31 {dimension_numbers = #tpu.dot_dimension_numbers<[1], [0], [0], [1], [0, 0, 1, 1], [], []>} : vector<8x16xbf16>, vector<16x128xbf16>, vector<8x128xf32> -> vector<8x128xf32>
      %c0_32 = arith.constant 0 : index
      %c0_33 = arith.constant 0 : index
      %46 = vector.load %arg5[%c0_32, %c0_33] : memref<8x1xf32, #tpu.memory_space<vmem>>, vector<8x1xf32>
      %47 = vector.broadcast %46 : vector<8x1xf32> to vector<8x128xf32>
      %48 = arith.mulf %45, %47 : vector<8x128xf32>
      %49 = arith.truncf %48 : vector<8x128xf32> to vector<8x128xbf16>
      %c0_34 = arith.constant 0 : index
      %c0_35 = arith.constant 0 : index
      %50 = vector.load %arg6[%c0_34, %c0_35] : memref<128x128xbf16, #tpu.memory_space<vmem>>, vector<128x128xbf16>
      %cst_36 = arith.constant dense<0.000000e+00> : vector<8x128xf32>
      %51 = tpu.matmul %49, %50, %cst_36 {dimension_numbers = #tpu.dot_dimension_numbers<[1], [0], [0], [1], [0, 0, 1, 1], [], []>} : vector<8x128xbf16>, vector<128x128xbf16>, vector<8x128xf32> -> vector<8x128xf32>
      %c0_37 = arith.constant 0 : index
      %c0_38 = arith.constant 0 : index
      %52 = vector.load %arg7[%c0_37, %c0_38] : memref<1x128xf32, #tpu.memory_space<vmem>>, vector<1x128xf32>
      %53 = vector.broadcast %52 : vector<1x128xf32> to vector<8x128xf32>
      %54 = arith.addf %51, %53 : vector<8x128xf32>
      %c0_39 = arith.constant 0 : index
      %c0_40 = arith.constant 0 : index
      %55 = vector.load %arg14[%c0_39, %c0_40] : memref<8x128xf32, #tpu.memory_space<vmem>>, vector<8x128xf32>
      tpu.vector_store %arg14[%c0_39, %c0_40], %54 {strides = array<i32>} : memref<8x128xf32, #tpu.memory_space<vmem>>, vector<8x128xf32>,
    } else {
    }
    return
  }
  func.func @transform_0(%arg0: i32) -> (i32, i32) {
    %c0_i32 = arith.constant 0 : i32
    %c0_i32_0 = arith.constant 0 : i32
    %c0_i32_1 = arith.constant 0 : i32
    return %c0_i32, %c0_i32_0 : i32, i32
  }
  func.func @transform_1(%arg0: i32) -> (i32, i32) {
    %c0_i32 = arith.constant 0 : i32
    %c0_i32_0 = arith.constant 0 : i32
    %c0_i32_1 = arith.constant 0 : i32
    return %c0_i32, %c0_i32_0 : i32, i32
  }
  func.func @transform_2(%arg0: i32) -> (i32, i32) {
    %c0_i32 = arith.constant 0 : i32
    %c0_i32_0 = arith.constant 0 : i32
    %c0_i32_1 = arith.constant 0 : i32
    return %c0_i32, %c0_i32_0 : i32, i32
  }
  func.func @transform_3(%arg0: i32) -> (i32, i32) {
    %c0_i32 = arith.constant 0 : i32
    %c0_i32_0 = arith.constant 0 : i32
    %c0_i32_1 = arith.constant 0 : i32
    return %c0_i32, %c0_i32_0 : i32, i32
  }
  func.func @transform_4(%arg0: i32) -> (i32, i32) {
    %c0_i32 = arith.constant 0 : i32
    %c0_i32_0 = arith.constant 0 : i32
    %c0_i32_1 = arith.constant 0 : i32
    return %c0_i32, %c0_i32_0 : i32, i32
  }
  func.func @transform_5(%arg0: i32) -> (i32, i32) {
    %c0_i32 = arith.constant 0 : i32
    %c0_i32_0 = arith.constant 0 : i32
    %c0_i32_1 = arith.constant 0 : i32
    return %c0_i32, %c0_i32_0 : i32, i32
  }
  func.func @transform_6(%arg0: i32) -> (i32, i32) {
    %c0_i32 = arith.constant 0 : i32
    %c0_i32_0 = arith.constant 0 : i32
    %c0_i32_1 = arith.constant 0 : i32
    return %c0_i32, %c0_i32_0 : i32, i32
  }
  func.func @transform_7(%arg0: i32) -> (i32, i32, i32) {
    %c0_i32 = arith.constant 0 : i32
    %c0_i32_0 = arith.constant 0 : i32
    %c0_i32_1 = arith.constant 0 : i32
    return %arg0, %c0_i32, %c0_i32_0 : i32, i32, i32
  }
  func.func @transform_8(%arg0: i32) -> (i32, i32, i32) {
    %c0_i32 = arith.constant 0 : i32
    %c0_i32_0 = arith.constant 0 : i32
    %c0_i32_1 = arith.constant 0 : i32
    return %arg0, %c0_i32, %c0_i32_0 : i32, i32, i32
  }
  func.func @transform_9(%arg0: i32) -> (i32, i32, i32) {
    %c3_i32 = arith.constant 3 : i32
    %0 = arith.minsi %arg0, %c3_i32 : i32
    %c0_i32 = arith.constant 0 : i32
    %c0_i32_0 = arith.constant 0 : i32
    %c0_i32_1 = arith.constant 0 : i32
    return %0, %c0_i32, %c0_i32_0 : i32, i32, i32
  }
  func.func @transform_10(%arg0: i32) -> (i32, i32, i32) {
    %c3_i32 = arith.constant 3 : i32
    %0 = arith.minsi %arg0, %c3_i32 : i32
    %c0_i32 = arith.constant 0 : i32
    %c0_i32_0 = arith.constant 0 : i32
    %c0_i32_1 = arith.constant 0 : i32
    return %0, %c0_i32, %c0_i32_0 : i32, i32, i32
  }
  func.func @transform_11(%arg0: i32) -> (i32, i32, i32) {
    %c0_i32 = arith.constant 0 : i32
    %c0_i32_0 = arith.constant 0 : i32
    %c0_i32_1 = arith.constant 0 : i32
    return %arg0, %c0_i32, %c0_i32_0 : i32, i32, i32
  }
  func.func @transform_12(%arg0: i32) -> (i32, i32, i32) {
    %c0_i32 = arith.constant 0 : i32
    %c0_i32_0 = arith.constant 0 : i32
    %c0_i32_1 = arith.constant 0 : i32
    return %arg0, %c0_i32, %c0_i32_0 : i32, i32, i32
  }
  func.func @transform_13(%arg0: i32) -> (i32, i32) {
    %c0_i32 = arith.constant 0 : i32
    %c0_i32_0 = arith.constant 0 : i32
    %c0_i32_1 = arith.constant 0 : i32
    return %c0_i32, %c0_i32_0 : i32, i32
  }
}

</mosaic_0001>

<bundles_post_ra>
// kernel: tpu_custom_call.1
= control target key start
LH: loop header
LB: loop body
LE: loop exit
PB: predicated region body
PF: predicated region fallthrough
CT: control target
= control target key end

     0   :  { %s3004_s0 = inlined_call_operand.vmem [shape: f32[16,128], index: 0, kind: input, shape index: {}]   ;;  %s3005_s1 = inlined_call_operand.hbm [shape: bf16[16,16], index: 1, kind: input, shape index: {}]   ;;  %s3006_s2 = inlined_call_operand.vmem [shape: bf16[16,8], index: 2, kind: input, shape index: {}]   ;;  %s3007_s3 = inlined_call_operand.hbm [shape: bf16[8,16], index: 3, kind: input, shape index: {}]   ;;  %s3008_s4 = inlined_call_operand.vmem [shape: f32[8,1], index: 4, kind: input, shape index: {}]   ;;  %s3009_s5 = inlined_call_operand.hbm [shape: bf16[128,128], index: 5, kind: input, shape index: {}]   ;;  %s3010_s6 = inlined_call_operand.vmem [shape: f32[1,128], index: 6, kind: input, shape index: {}]   ;;  %s3011_s7 = inlined_call_operand.hbm [shape: bf16[5,128,128], index: 7, kind: input, shape index: {}]   ;;  %s3012_s8 = inlined_call_operand.hbm [shape: bf16[5,128,128], index: 8, kind: input, shape index: {}]   ;;  %s3013_s9 = inlined_call_operand.hbm [shape: bf16[4,128,128], index: 9, kind: input, shape index: {}]   ;;  %s3014_s10 = inlined_call_operand.hbm [shape: bf16[4,128,128], index: 10, kind: input, shape index: {}]   ;;  %s3015_s11 = inlined_call_operand.vmem [shape: f32[5,2,128], index: 11, kind: input, shape index: {}]   ;;  %s3016_s12 = inlined_call_operand.vmem [shape: f32[5,3,128], index: 12, kind: input, shape index: {}]   ;;  %s3017_s13 = inlined_call_operand.hbm [shape: f32[8,128], index: 13, kind: output, shape index: {}]  }
   0x1   :  { %3053 = sst [smem:[#allocation33_spill]] %s3004_s0 }
   0x2   :  { %3054 = sst [smem:[#allocation34_spill]] %s3006_s2 }
   0x3   :  { %3055 = sst [smem:[#allocation35_spill]] %s3007_s3 }
   0x4   :  { %3056 = sst [smem:[#allocation36_spill]] %s3008_s4 }
   0x5   :  { %3057 = sst [smem:[#allocation37_spill]] %s3010_s6 }
   0x6   :  { %3058 = sst [smem:[#allocation38_spill]] %s3011_s7 }
   0x7   :  { %3059 = sst [smem:[#allocation39_spill]] %s3013_s9 }
   0x8   :  { %3060 = sst [smem:[#allocation40_spill]] %s3015_s11 }
   0x9   :  { %3061 = sst [smem:[#allocation41_spill]] %s3016_s12 }
   0xa   :  { %3062 = sst [smem:[#allocation42_spill]] %s3017_s13 }
   0xb   :  { %18 = vsyncpa [#allocation5], 0 }
   0xc   :  { %19 = vsyncpa [#allocation8], 0 }
   0xd   :  { %20 = vsyncpa [#allocation11], 0 }
   0xe   :  { %22 = vsyncpa [#allocation11 + $0x1], 0 }
   0xf   :  { %23 = vsyncpa [#allocation14], 0 }
  0x10   :  { %25 = vsyncpa [#allocation14 + $0x1], 0 }
  0x11   :  { %26 = vsyncpa [#allocation6], 0  ;;  %s2464_s25 = smov 0   ;;  %s2466_s26 = smov 0  }
  0x12   :  { %s2468_s27 = smov 0   ;;  %s2470_s28 = smov 0  }
  0x13   :  { %s2472_s29 = smov 0   ;;  %s2474_s30 = smov 0  }
  0x14   :  { %s2476_s14 = smov 0  }
  0x15 LB: > { %3063 = sst [smem:[#allocation22_spill]] %s2354_s26  ;;  %s2496_s15 = sadd.s32 4294967295, %s2374_s14   ;;  %s2374_s14 = sphi %s2476_s14, %s3125_s14   ;;  %s2370_s30 = sphi %s2474_s30, %s3131_s30   ;;  %s2366_s29 = sphi %s2472_s29, %s3130_s29   ;;  %s2362_s28 = sphi %s2470_s28, %s3129_s28   ;;  %s2358_s27 = sphi %s2468_s27, %s3128_s27   ;;  %s2354_s26 = sphi %s2466_s26, %s3127_s26   ;;  %s2350_s25 = sphi %s2464_s25, %s3126_s25  }
  0x16   : > { %3064 = sst [smem:[#allocation23_spill]] %s2358_s27  ;;  %p199_p0 = scmp.ne.s32.totalorder %s2366_s29, %s2362_s28 }
  0x17   : > { %3065 = sst [smem:[#allocation24_spill]] %s2366_s29  ;;  %p3019_p1 = scmp.eq.s32.totalorder %s2496_s15, 0 }
  0x18   : > { %3066 = sst [smem:[#allocation25_spill]] %s2370_s30  ;;  %p255_p2 = scmp.ne.s32.totalorder %s2354_s26, %s2350_s25 }
  0x19   : > { %3067 = sst [smem:[#allocation26_spill]] %s2496_s15  ;;  %p1634_p3 = scmp.ge.s32.totalorder %s2374_s14, 1 }
  0x1a   : > { %p369_p4 = scmp.lt.s32.totalorder %s2374_s14, 6  ;;  %p2505_p5 = por %p3019_p1, %p199_p0 }
  0x1b   : > { %p2511_p6 = por %p255_p2, %p3019_p1  ;;  %s2376_s19 = smov [#allocation7]  }
  0x1c   : > { %s3068_s16 = scalar_select %p2505_p5, 1, 0 }
  0x1d   : > { %s3070_s17 = scalar_select %p2511_p6, 1, 0 }
  0x1e   : > { %3069 = sst [smem:[#allocation27_spill]] %s3068_s16  ;;  %p2515_p7 = pnand %p1634_p3, %p369_p4 }
  0x1f   : > { %3071 = sst [smem:[#allocation28_spill]] %s3070_s17  ;;  %s401_s20 = sshll.u32 %s2376_s19, 4  ;;  %s402_s20 = int_to_ptr.vmem [resolvable:$true] %s401_s20 }
  0x20   : > { %s3072_s18 = scalar_select %p2515_p7, 1, 0 }
  0x21   : > { %p1925_p9 = pneg %p2515_p7  ;;  %s3075_s3 = sld [smem:[#allocation35_spill]] }
  0x22   : > { %3073 = sst [smem:[#allocation29_spill]] %s3072_s18 }
  0x23   : > { %p2524_p10 = pnand %p1925_p9, %p3019_p1 }
  0x25   : > { %s3074_s21 = scalar_select %p2524_p10, 1, 0 }
  0x26   : > { %p2539_p0 = pneg %p2524_p10 }
  0x27   : > { %s2070_s24 = scalar_lea.hbm %s3075_s3, 64 }
  0x28   : > { %p2071_p13 = scmp.ne.s32.totalorder %s3075_s3, %s2070_s24  ;;  %p2077_p4 = scmp.lt.u32.totalorder %s2070_s24, %s3075_s3 }
  0x2a   : > { %p2073_p2 = pnand %p2539_p0, %p2071_p13 }
  0x2c   : > { %p2074_p3 = pneg %p2073_p2 }
  0x2e   : > { %p2079_p9 = pnand %p2077_p4, %p2074_p3 }
  0x30   : > { %2082 = shalt.err (!%p2079_p9)
}
  0x31   : > { %s2083_s22 = scalar_lea.vmem %s402_s20, 64  ;;  %p2091_p11 = scmp.lt.s32.totalorder %s402_s20, %s402_s20 }
  0x32   : > { %p2084_p8 = scmp.ne.s32.totalorder %s402_s20, %s2083_s22  ;;  %p2092_p6 = scmp.lt.s32.totalorder %s2083_s22, %s2083_s22 }
  0x34   : > { %p2086_p1 = pnand %p2084_p8, %p2539_p0  ;;  %p2093_p5 = por %p2092_p6, %p2091_p11 }
  0x36   : > { %p2087_p12 = pneg %p2086_p1 }
  0x38   : > { %p2094_p7 = pnand %p2093_p5, %p2087_p12 }
  0x3a   : > { %2097 = shalt.err (!%p2094_p7)
}
  0x3b   : > { %1931 = dma.hbm_to_vmem [thread:$0]  (!%p2524_p10), %s3075_s3, 64, %s402_s20, [#allocation8]  }
  0x3c   : > { %p3077_p1 = scmp.ne.s32.totalorder %s2370_s30, %s2366_s29  ;;  %p3078_p6 = scmp.eq.s32.totalorder %s2374_s14, 0 }
  0x3d   : > { %p3028_p7 = scmp.lt.s32.totalorder %s2374_s14, 5  ;;  %s433_s13 = sand.u32 1, %s2370_s30  }
  0x3e   : > { %p195_p5 = por %p3078_p6, %p3077_p1  ;;  %s2563_s24 = sshll.u32 %s433_s13, 6 }
  0x3f   : > { %s1720_s28 = sshll.u32 %s2374_s14, 10  ;;  %s3079_s7 = sld [smem:[#allocation38_spill]] }
  0x40   : > { %s435_s4 = scalar_lea.vmem [#allocation10], %s2563_s24  ;;  %p2576_p8 = pnand %p3028_p7, %p195_p5 }
  0x41   : > { %s442_s20 = sshll.u32 %s435_s4, 4  ;;  %s2584_s23 = scalar_lea.hbm %s3012_s8, %s1720_s28  ;;  %s2572_s20 = int_to_ptr.vmem [resolvable:$true] %s442_s20 }
  0x42   : > { %s3080_s6 = scalar_select %p2576_p8, 1, 0 }
  0x43   : > { %s3081_s2 = sand.u32 1, %s2374_s14   ;;  %p3038_p12 = pneg %p2576_p8 }
  0x44   : > { %s2588_s0 = scalar_lea.sflag [#allocation11], %s3081_s2 }
  0x45   : > { %s2569_s25 = scalar_lea.hbm %s3079_s7, %s1720_s28  ;;  %s2103_s13 = scalar_lea.hbm %s3079_s7, 5120 }
  0x46   : > { %s2098_s12 = scalar_lea.hbm %s2569_s25, 1024  ;;  %p2104_p3 = scmp.lt.u32.totalorder %s2569_s25, %s3079_s7 }
  0x47   : > { %p2099_p11 = scmp.ne.s32.totalorder %s2569_s25, %s2098_s12  ;;  %p2105_p4 = scmp.lt.u32.totalorder %s2103_s13, %s2098_s12 }
  0x48   : > { %p2107_p1 = scmp.lt.u32.totalorder %s2098_s12, %s2569_s25 }
  0x49   : > { %p2101_p13 = pnand %p3038_p12, %p2099_p11  ;;  %p2106_p9 = por %p2105_p4, %p2104_p3 }
  0x4b   : > { %p2102_p2 = pneg %p2101_p13  ;;  %p2108_p6 = por %p2107_p1, %p2106_p9 }
  0x4d   : > { %p2109_p5 = pnand %p2108_p6, %p2102_p2 }
  0x4f   : > { %2112 = shalt.err (!%p2109_p5)
}
  0x50   : > { %s2113_s2 = scalar_lea.vmem %s2572_s20, 1024  ;;  %s2377_s3 = smov [#allocation10]  }
  0x51   : > { %p2114_p11 = scmp.ne.s32.totalorder %s2572_s20, %s2113_s2  ;;  %s2118_s11 = sshll.u32 %s2377_s3, 4  ;;  %s2119_s11 = int_to_ptr.vmem [resolvable:$false] %s2118_s11 }
  0x52   : > { %s2120_s16 = scalar_lea.vmem %s2119_s11, 2048  ;;  %p2121_p10 = scmp.lt.s32.totalorder %s2572_s20, %s2119_s11 }
  0x53   : > { %p2116_p13 = pnand %p2114_p11, %p3038_p12  ;;  %p2122_p3 = scmp.lt.s32.totalorder %s2120_s16, %s2113_s2 }
  0x55   : > { %p2117_p7 = pneg %p2116_p13  ;;  %p2123_p4 = por %p2122_p3, %p2121_p10 }
  0x57   : > { %p2124_p9 = pnand %p2123_p4, %p2117_p7 }
  0x59   : > { %2127 = shalt.err (!%p2124_p9)
}
  0x5a   : > { %s3031_s12 = smov 64   ;;  %s3033_s17 = smov 4  }
  0x5b   : > { %1938 = dma.hbm_to_vmem [thread:$0]  (!%p2576_p8), %s2569_s25, 1024, %s2572_s20, %s2588_s0, %s3031_s12, %s3031_s12, %s3033_s17  }
  0x5c   : > { %s456_s28 = scalar_lea.vmem [#allocation12], %s2563_s24  ;;  %s2623_s22 = sadd.s32 1, %s2374_s14  }
  0x5d   : > { %s2620_s13 = sshll.u32 %s456_s28, 4  ;;  %3082 = sst [smem:[#allocation30_spill]] %s2623_s22  ;;  %s2701_s13 = int_to_ptr.vmem [resolvable:$true] %s2620_s13 }
  0x5e   : > { %s183_s4 = ssub.s32 %s2374_s14, %s2623_s22  ;;  %p235_p10 = scmp.lt.s32.totalorder %s2374_s14, 3 }
  0x5f   : > { %p184_p7 = scmp.eq.s32.totalorder %s183_s4, 0  ;;  %p237_p2 = scmp.lt.s32.totalorder %s2623_s22, 3 }
  0x60   : > { %s2630_s2 = scalar_select %p235_p10, %s2374_s14, 3 }
  0x61   : > { %s3083_s3 = sadd.s32 1, %s2370_s30  ;;  %s242_s20 = sadd.s32 1, %s2358_s27 }
  0x62   : > { %s2635_s24 = scalar_select %p184_p7, %s2370_s30, %s3083_s3  }
  0x63   : > { %s238_s25 = scalar_select %p237_p2, %s2623_s22, 3 }
  0x64   : > { %3084 = sst [smem:[#allocation31_spill]] %s2635_s24  ;;  %p249_p1 = scmp.ne.s32.totalorder %s2358_s27, %s2354_s26 }
  0x65   : > { %s239_s11 = ssub.s32 %s2630_s2, %s238_s25  ;;  %p3085_p5 = scmp.eq.s32.totalorder %s2374_s14, 0 }
  0x66   : > { %p240_p6 = scmp.eq.s32.totalorder %s239_s11, 0  ;;  %s475_s16 = sand.u32 1, %s2358_s27  }
  0x67   : > { %p251_p11 = por %p249_p1, %p3085_p5  ;;  %s3035_s28 = sshll.u32 %s2630_s2, 10 }
  0x68   : > { %s2647_s4 = scalar_select %p240_p6, %s2358_s27, %s242_s20  }
  0x69   : > { %s2649_s12 = sshll.u32 %s475_s16, 6  ;;  %s3087_s9 = sld [smem:[#allocation39_spill]] }
  0x6a   : > { %3086 = sst [smem:[#allocation32_spill]] %s2647_s4  ;;  %p3088_p13 = scmp.lt.s32.totalorder %s2374_s14, 5 }
  0x6b   : > { %s477_s20 = scalar_lea.vmem [#allocation13], %s2649_s12  ;;  %s3090_s16 = sand.u32 1, %s2374_s14  }
  0x6c   : > { %p2660_p3 = pnand %p3088_p13, %p251_p11  ;;  %s486_s11 = sshll.u32 %s477_s20, 4  ;;  %s2665_s11 = int_to_ptr.vmem [resolvable:$true] %s486_s11 }
  0x6d   : > { %s2669_s7 = scalar_lea.sflag [#allocation14], %s3090_s16 }
  0x6e   : > { %s3089_s25 = scalar_select %p2660_p3, 1, 0 }
  0x6f   : > { %s2656_s3 = scalar_lea.hbm %s3087_s9, %s3035_s28  ;;  %p3050_p9 = pneg %p2660_p3 }
  0x70   : > { %s2128_s17 = scalar_lea.hbm %s2656_s3, 1024  ;;  %s2133_s30 = scalar_lea.hbm %s3087_s9, 4096 }
  0x71   : > { %p2129_p4 = scmp.ne.s32.totalorder %s2656_s3, %s2128_s17  ;;  %p2134_p2 = scmp.lt.u32.totalorder %s2656_s3, %s3087_s9 }
  0x72   : > { %p2135_p1 = scmp.lt.u32.totalorder %s2133_s30, %s2128_s17  ;;  %p2137_p5 = scmp.lt.u32.totalorder %s2128_s17, %s2656_s3 }
  0x73   : > { %p2131_p10 = pnand %p3050_p9, %p2129_p4 }
  0x74   : > { %p2136_p6 = por %p2135_p1, %p2134_p2 }
  0x75   : > { %p2132_p7 = pneg %p2131_p10 }
  0x76   : > { %p2138_p11 = por %p2137_p5, %p2136_p6 }
  0x78   : > { %p2139_p13 = pnand %p2138_p11, %p2132_p7 }
  0x7a   : > { %2142 = shalt.err (!%p2139_p13)
}
  0x7b   : > { %s2143_s14 = scalar_lea.vmem %s2665_s11, 1024  ;;  %s2380_s24 = smov [#allocation13]  }
  0x7c   : > { %p2144_p4 = scmp.ne.s32.totalorder %s2665_s11, %s2143_s14  ;;  %s2148_s28 = sshll.u32 %s2380_s24, 4  ;;  %s2149_s28 = int_to_ptr.vmem [resolvable:$false] %s2148_s28 }
  0x7d   : > { %s2150_s27 = scalar_lea.vmem %s2149_s28, 2048  ;;  %p2151_p8 = scmp.lt.s32.totalorder %s2665_s11, %s2149_s28 }
  0x7e   : > { %p2146_p10 = pnand %p2144_p4, %p3050_p9  ;;  %p2152_p2 = scmp.lt.s32.totalorder %s2150_s27, %s2143_s14 }
  0x80   : > { %p2147_p12 = pneg %p2146_p10  ;;  %p2153_p1 = por %p2152_p2, %p2151_p8 }
  0x82   : > { %p2154_p6 = pnand %p2153_p1, %p2147_p12 }
  0x84   : > { %2157 = shalt.err (!%p2154_p6)
}
  0x85   : > { %s3091_s30 = smov 4   ;;  %s3092_s4 = smov 64  }
  0x86   : > { %1944 = dma.hbm_to_vmem [thread:$0]  (!%p2660_p3), %s2656_s3, 1024, %s2665_s11, %s2669_s7, %s3092_s4, %s3092_s4, %s3091_s30  }
  0x87   : > { %s3093_s20 = sshll.u32 %s2630_s2, 10  ;;  %s500_s24 = scalar_lea.vmem [#allocation15], %s2649_s12 }
  0x88   : > { %s2708_s14 = scalar_lea.hbm %s3014_s10, %s3093_s20  ;;  %s509_s28 = sshll.u32 %s500_s24, 4  ;;  %s2732_s28 = int_to_ptr.vmem [resolvable:$true] %s509_s28 }
  0x89   : > { %s2381_s27 = smov [#allocation4]   ;;  %s2382_s22 = smov [#allocation9]  }
  0x8a   : > { %s384_s9 = sshll.u32 %s2381_s27, 4  ;;  %s414_s26 = sshll.u32 %s2382_s22, 4  ;;  %s385_s9 = int_to_ptr.vmem [resolvable:$true] %s384_s9  ;;  %s415_s26 = int_to_ptr.vmem [resolvable:$true] %s414_s26 }
  0x8b   : > { %s2158_s18 = scalar_lea.hbm %s3005_s1, 128 }
  0x8c   : > { %p2159_p8 = scmp.ne.s32.totalorder %s3005_s1, %s2158_s18  ;;  %p2165_p5 = scmp.lt.u32.totalorder %s2158_s18, %s3005_s1 }
  0x8e   : > { %p2161_p12 = pnand %p2159_p8, %p2539_p0 }
  0x90   : > { %p2162_p7 = pneg %p2161_p12 }
  0x92   : > { %p2167_p11 = pnand %p2165_p5, %p2162_p7 }
  0x94   : > { %2170 = shalt.err (!%p2167_p11)
}
  0x95   : > { %s2171_s12 = scalar_lea.vmem %s385_s9, 128  ;;  %p2179_p2 = scmp.lt.s32.totalorder %s385_s9, %s385_s9 }
  0x96   : > { %p2172_p13 = scmp.ne.s32.totalorder %s385_s9, %s2171_s12  ;;  %p2180_p1 = scmp.lt.s32.totalorder %s2171_s12, %s2171_s12 }
  0x98   : > { %p2174_p4 = pnand %p2172_p13, %p2539_p0  ;;  %p2181_p6 = por %p2180_p1, %p2179_p2 }
  0x9a   : > { %p2175_p10 = pneg %p2174_p4 }
  0x9c   : > { %p2182_p9 = pnand %p2181_p6, %p2175_p10 }
  0x9e   : > { %2185 = shalt.err (!%p2182_p9)
}
  0x9f   : > { %p3094_p8 = scmp.ne.s32.totalorder %s3074_s21, 0  ;;  %s2186_s16 = scalar_lea.hbm %s3009_s5, 1024 }
  0xa0   : > { %p2187_p9 = scmp.ne.s32.totalorder %s3009_s5, %s2186_s16  ;;  %p2193_p5 = scmp.lt.u32.totalorder %s2186_s16, %s3009_s5 }
  0xa1   : > { %1928 = dma.hbm_to_vmem [thread:$0]  (!%p3094_p8), %s3005_s1, 128, %s385_s9, [#allocation5], %s3092_s4, %s3092_s4, %s3091_s30  }
  0xa2   : > { %p2189_p12 = pnand %p2187_p9, %p2539_p0 }
  0xa4   : > { %p2190_p7 = pneg %p2189_p12 }
  0xa6   : > { %p2195_p11 = pnand %p2193_p5, %p2190_p7 }
  0xa8   : > { %2198 = shalt.err (!%p2195_p11)
}
  0xa9   : > { %s2199_s9 = scalar_lea.vmem %s415_s26, 1024  ;;  %p2207_p2 = scmp.lt.s32.totalorder %s415_s26, %s415_s26 }
  0xaa   : > { %p2200_p13 = scmp.ne.s32.totalorder %s415_s26, %s2199_s9  ;;  %p2208_p1 = scmp.lt.s32.totalorder %s2199_s9, %s2199_s9 }
  0xac   : > { %p2202_p4 = pnand %p2200_p13, %p2539_p0  ;;  %p2209_p6 = por %p2208_p1, %p2207_p2 }
  0xae   : > { %p2203_p10 = pneg %p2202_p4 }
  0xb0   : > { %p2210_p3 = pnand %p2209_p6, %p2203_p10 }
  0xb2   : > { %2213 = shalt.err (!%p2210_p3)
}
  0xb3   : > { %1934 = dma.hbm_to_vmem [thread:$0]  (!%p3094_p8), %s3009_s5, 1024, %s415_s26, [#allocation8], %s3092_s4, %s3092_s4, %s3091_s30  }
  0xb4   : > { %s2214_s19 = scalar_lea.hbm %s2584_s23, 1024  ;;  %p3095_p9 = scmp.ne.s32.totalorder %s3080_s6, 0 }
  0xb5   : > { %p2215_p0 = scmp.ne.s32.totalorder %s2584_s23, %s2214_s19  ;;  %s2219_s12 = scalar_lea.hbm %s3012_s8, 5120 }
  0xb6   : > { %p3096_p12 = pneg %p3095_p9  ;;  %p2220_p5 = scmp.lt.u32.totalorder %s2584_s23, %s3012_s8 }
  0xb7   : > { %p2221_p11 = scmp.lt.u32.totalorder %s2219_s12, %s2214_s19  ;;  %p2223_p4 = scmp.lt.u32.totalorder %s2214_s19, %s2584_s23 }
  0xb8   : > { %p2217_p7 = pnand %p2215_p0, %p3096_p12 }
  0xb9   : > { %p2222_p13 = por %p2221_p11, %p2220_p5 }
  0xba   : > { %p2218_p3 = pneg %p2217_p7 }
  0xbb   : > { %p2224_p10 = por %p2223_p4, %p2222_p13 }
  0xbd   : > { %p2225_p2 = pnand %p2224_p10, %p2218_p3 }
  0xbf   : > { %2228 = shalt.err (!%p2225_p2)
}
  0xc0   : > { %s2229_s26 = scalar_lea.vmem %s2701_s13, 1024  ;;  %p3097_p1 = pmov %p3096_p12 }
  0xc1   : > { %p2230_p8 = scmp.ne.s32.totalorder %s2701_s13, %s2229_s26  ;;  %s2383_s18 = smov [#allocation12]  }
  0xc2   : > { %s2234_s22 = sshll.u32 %s2383_s18, 4  ;;  %s2235_s22 = int_to_ptr.vmem [resolvable:$false] %s2234_s22 }
  0xc3   : > { %p2232_p6 = pnand %p2230_p8, %p3097_p1  ;;  %s2236_s16 = scalar_lea.vmem %s2235_s22, 2048 }
  0xc4   : > { %p2237_p12 = scmp.lt.s32.totalorder %s2701_s13, %s2235_s22  ;;  %p2238_p7 = scmp.lt.s32.totalorder %s2236_s16, %s2229_s26 }
  0xc5   : > { %p2233_p0 = pneg %p2232_p6 }
  0xc6   : > { %p2239_p5 = por %p2238_p7, %p2237_p12 }
  0xc8   : > { %p2240_p11 = pnand %p2239_p5, %p2233_p0 }
  0xca   : > { %2243 = shalt.err (!%p2240_p11)
}
  0xcb   : > { %1941 = dma.hbm_to_vmem [thread:$0]  (!%p3095_p9), %s2584_s23, 1024, %s2701_s13, %s2588_s0, %s3092_s4, %s3092_s4, %s3091_s30  }
  0xcc   : > { %s2244_s17 = scalar_lea.hbm %s2708_s14, 1024  ;;  %p3098_p13 = scmp.ne.s32.totalorder %s3089_s25, 0 }
  0xcd   : > { %p2245_p3 = scmp.ne.s32.totalorder %s2708_s14, %s2244_s17  ;;  %s2249_s27 = scalar_lea.hbm %s3014_s10, 4096 }
  0xce   : > { %p3099_p4 = pneg %p3098_p13  ;;  %p2250_p8 = scmp.lt.u32.totalorder %s2708_s14, %s3014_s10 }
  0xcf   : > { %p2251_p1 = scmp.lt.u32.totalorder %s2249_s27, %s2244_s17  ;;  %p2253_p0 = scmp.lt.u32.totalorder %s2244_s17, %s2708_s14 }
  0xd0   : > { %p2247_p10 = pnand %p2245_p3, %p3099_p4 }
  0xd1   : > { %p2252_p6 = por %p2251_p1, %p2250_p8 }
  0xd2   : > { %p2248_p2 = pneg %p2247_p10 }
  0xd3   : > { %p2254_p12 = por %p2253_p0, %p2252_p6 }
  0xd5   : > { %p2255_p7 = pnand %p2254_p12, %p2248_p2 }
  0xd7   : > { %2258 = shalt.err (!%p2255_p7)
}
  0xd8   : > { %s2259_s0 = scalar_lea.vmem %s2732_s28, 1024  ;;  %p3100_p5 = pmov %p3099_p4 }
  0xd9   : > { %p2260_p9 = scmp.ne.s32.totalorder %s2732_s28, %s2259_s0  ;;  %s2384_s23 = smov [#allocation15]  }
  0xda   : > { %s2264_s13 = sshll.u32 %s2384_s23, 4  ;;  %s2265_s13 = int_to_ptr.vmem [resolvable:$false] %s2264_s13 }
  0xdb   : > { %p2262_p11 = pnand %p2260_p9, %p3100_p5  ;;  %s2266_s11 = scalar_lea.vmem %s2265_s13, 2048 }
  0xdc   : > { %p2267_p4 = scmp.lt.s32.totalorder %s2732_s28, %s2265_s13  ;;  %p2268_p10 = scmp.lt.s32.totalorder %s2266_s11, %s2259_s0 }
  0xdd   : > { %p2263_p3 = pneg %p2262_p11 }
  0xde   : > { %p2269_p8 = por %p2268_p10, %p2267_p4 }
  0xe0   : > { %p2270_p1 = pnand %p2269_p8, %p2263_p3 }
  0xe2   : > { %2273 = shalt.err (!%p2270_p1)
}
  0xe3   : > { %1947 = dma.hbm_to_vmem [thread:$0]  (!%p3098_p13), %s2708_s14, 1024, %s2732_s28, %s2669_s7, %s3092_s4, %s3092_s4, %s3091_s30  }
  0xe4   : > { %s3101_s2 = sld [smem:[#allocation29_spill]] }
  0xea   : > { %p3102_p2 = scmp.ne.s32.totalorder %s3101_s2, 0 }
  0xeb   : > { %s3103_s19 = sld [smem:[#allocation26_spill]] (!%p3102_p2) }
  0xec   : > { %535 = sbr.rel (%p3102_p2) target bundleno = 1892 (0x764), region = 72 }
  0xf1   : > { %p3104_p6 = scmp.eq.s32.totalorder (!%p3102_p2), %s3103_s19, 0 }
  0xf3   : > { %2329 = dma.done.wait (%p3104_p6), [#allocation5], 128   ;;  %p3105_p0 = pmov %p3104_p6 }
  0xf5   : > { %2331 = vsyncadd (%p3105_p0), [#allocation5], 4294967168  ;;  %p3106_p12 = pmov %p3105_p0 }
  0xf6   : > { %p3107_p7 = pmov %p3105_p0 }
  0xf7   : > { %2333 = dma.done.wait (%p3106_p12), [#allocation8], 1088  }
  0xf8   : > { %2335 = vsyncadd (%p3107_p7), [#allocation8], 4294966208  ;;  %s3108_s25 = sld [smem:[#allocation24_spill]]  ;;  %s3109_s20 = sld [smem:[#allocation27_spill]] }
  0xf9   : > { %s549_s21 = sand.u32 1, %s3103_s19  }
  0xfa   : > { %s550_s4 = scalar_lea.sflag [#allocation11], %s549_s21 }
  0xfe   : > { %s551_s7 = sand.u32 1, %s3108_s25   ;;  %p3110_p13 = scmp.ne.s32.totalorder %s3109_s20, 0 }
  0xff   : > { %s1655_s30 = sshll.u32 %s551_s7, 6 }
 0x100   : > { %s2821_s14 = scalar_lea.vmem [#allocation10], %s1655_s30 }
 0x101   : > { %2337 = dma.done.wait (%p3110_p13), %s550_s4, 2048  }
 0x102   : > { %2339 = vsyncadd (%p3110_p13), %s550_s4, 4294965248  ;;  %s3111_s28 = sld [smem:[#allocation22_spill]]  ;;  %s3112_s12 = sld [smem:[#allocation28_spill]] }
 0x103   : > { %s2828_s26 = scalar_lea.vmem [#allocation12], %s1655_s30  ;;  %s568_s18 = scalar_lea.sflag [#allocation14], %s549_s21 }
 0x108   : > { %s569_s29 = sand.u32 1, %s3111_s28   ;;  %p3113_p9 = scmp.ne.s32.totalorder %s3112_s12, 0 }
 0x109   : > { %s1657_s15 = sshll.u32 %s569_s29, 6 }
 0x10a   : > { %s2830_s22 = scalar_lea.vmem [#allocation13], %s1657_s15 }
 0x10b   : > { %2341 = dma.done.wait (%p3113_p9), %s568_s18, 2048  }
 0x10c   : > { %2343 = vsyncadd (%p3113_p9), %s568_s18, 4294965248  ;;  %p645_p5 = scmp.lt.s32.totalorder %s3103_s19, 4  ;;  %s3114_s3 = sld [smem:[#allocation40_spill]] }
 0x10d   : > { %s3115_s13 = sld [smem:[#allocation41_spill]]  ;;  %s2848_s2 = scalar_lea.vmem [#allocation15], %s1657_s15 }
 0x10e   : > { %s646_s16 = scalar_select %p645_p5, %s3103_s19, 4 }
 0x10f   : > { %p3116_p11 = scmp.ne.s32.totalorder %s3103_s19, 0 }
 0x110   : > { %s1659_s17 = sshll.u32 %s646_s16, 1  ;;  %s1660_s24 = sshll.u32 %s646_s16, 2  ;;  %v2385_v2 = vmov (!%p3116_p11), 0.0  }
 0x111   : > { %658 = sbr.rel (%p3116_p11) target bundleno = 281 (0x119), region = 104  ;;  %s3117_s21 = sld [smem:[#allocation33_spill]] (!%p3116_p11)  ;;  %663 = vst [vmem:[#allocation3] sm:$0xff] (!%p3116_p11), %v2385_v2 }
 0x112   : > { %s2841_s9 = scalar_lea.vmem %s3114_s3, %s1659_s17 }
 0x113   : > { %s2846_s11 = scalar_lea.vmem %s3115_s13, %s1660_s24 }
 0x117   : > { %v659_v0 = vld [vmem:[%s3117_s21] sm:$0xff] (!%p3116_p11)  ;;  %v660_v1 = vld [vmem:[%s3117_s21 + $0x8] sm:$0xff] (!%p3116_p11) }
 0x118   : > { %661 = vst [vmem:[#allocation2] sm:$0xff] %v659_v0  ;;  %662 = vst [vmem:[#allocation2 + $0x8] sm:$0xff] %v660_v1 }
 0x119 PF: > { %v2858_v3 = vld [vmem:[#allocation3] sm:$0xff]  ;;  %vm679_vm0 = vcmask 1043456   ;;  %v2386_v4 = vmov 0.0   ;;  %vm2387_vm1 = vmmov 0   ;;  %s3118_s28 = sld [smem:[#allocation34_spill]]  ;;  %vm675_vm2 = vcmask 64512  }
 0x11a   : > { %1777 = vmatprep.subr.bf16.mxu0 %v2386_v4  ;;  %v669_v5 = vpack.c.bf16 %v2858_v3, %v2858_v3  ;;  %1779 = vmatprep.mubr.msk.bf16.mxu0 %vm2387_vm1, %v2386_v4  ;;  %v2029_v8 = vld [vmem:[%s2821_s14] sm:$0xff]   ;;  %v2030_v9 = vld [vmem:[%s2821_s14 + $0x8] sm:$0xff]   ;;  %v2031_v10 = vld [vmem:[%s2821_s14 + $0x10] sm:$0xff]   ;;  %vm743_vm3 = vcmask 130048  }
 0x11b   : > { %1783 = vmatprep.subr.bf16.mxu1 %v2386_v4  ;;  %1785 = vmatprep.mubr.msk.bf16.mxu1 %vm2387_vm1, %v2386_v4  ;;  %v2032_v11 = vld [vmem:[%s2821_s14 + $0x18] sm:$0xff]   ;;  %v2033_v12 = vld [vmem:[%s2821_s14 + $0x20] sm:$0xff]   ;;  %v2034_v13 = vld [vmem:[%s2821_s14 + $0x28] sm:$0xff]  }
 0x11c   : > { %v681_v7 = vsel %vm679_vm0, %v669_v5, 0  ;;  %v1664_v16 = vld [vmem:[%s2846_s11] ss:$0 sm:$0xff]  ;;  %v2028_v28 = vld [vmem:[#allocation4] sm:$0xff]   ;;  %v2037_v31 = vld [vmem:[%s2828_s26] sm:$0xff]  }
 0x11d   : > { %1778 = vmatpush3.bf16.msra.mxu0 %v681_v7  ;;  %v2035_v29 = vld [vmem:[%s2821_s14 + $0x30] sm:$0xff]   ;;  %v2036_v30 = vld [vmem:[%s2821_s14 + $0x38] sm:$0xff]   ;;  %v2038_v32 = vld [vmem:[%s2828_s26 + $0x8] sm:$0xff]   ;;  %s3119_s14 = sld [smem:[#allocation26_spill]] }
 0x11e   : > { %1789 = vmatprep.subr.bf16.mxu0 %v2386_v4  ;;  %v2039_v33 = vld [vmem:[%s2828_s26 + $0x10] sm:$0xff]   ;;  %v2040_v34 = vld [vmem:[%s2828_s26 + $0x18] sm:$0xff]   ;;  %v2041_v35 = vld [vmem:[%s2828_s26 + $0x20] sm:$0xff]  }
 0x11f   : > { %v2027_v6 = vld [vmem:[%s3118_s28] sm:$0xff]   ;;  %v665_v17 = vld [vmem:[#allocation2 + $0x8] sm:$0xff]  ;;  %v2043_v44 = vld [vmem:[%s2828_s26 + $0x30] sm:$0xff]  }
 0x120   : > { %1780 = vmatmul.mubr.msk.bf16.vlgmr.msra.gmra.mrb[0].mxu0 %vm675_vm2, %v2027_v6  ;;  %v664_v14 = vld [vmem:[#allocation2] sm:$0xff]  ;;  %v2042_v36 = vld [vmem:[%s2828_s26 + $0x28] sm:$0xff]  }
 0x121   : > { %1805 = vmatprep.mubr.msk.bf16.mxu0 %vm2387_vm1, %v2386_v4  ;;  %1790 = vmatpush3.bf16.msra.mxu0 %v2029_v8  ;;  %v2044_v45 = vld [vmem:[%s2828_s26 + $0x38] sm:$0xff]  }
 0x122   : > { %1791 = vmatprep.subr.bf16.mxu0 %v2386_v4  ;;  %v1667_v46 = vld [vmem:[%s2841_s9] ss:$0 sm:$0xff]  ;;  %v1676_v56 = vld [vmem:[%s2846_s11 + $0x1] ss:$0 sm:$0xff] }
 0x123   : > { %p1685_p3 = scmp.eq.s32.totalorder %s3119_s14, 4 }
 0x124   : > { %v1022_v2 = vld [vmem:[#allocation7] sm:$0xf] (!%p1685_p3)  ;;  %v2388_v5 = vmov (!%p1685_p3), 0.0   ;;  %vm2389_vm4 = vmmov (!%p1685_p3), 0   ;;  %v2046_v6 = vld [vmem:[%s2830_s22 + $0x8] sm:$0xff] (!%p1685_p3)   ;;  %v2047_v7 = vld [vmem:[%s2830_s22 + $0x10] sm:$0xff] (!%p1685_p3)  }
 0x125   : > { %1792 = vmatpush3.bf16.msra.mxu0 %v2030_v9  ;;  %v2048_v8 = vld [vmem:[%s2830_s22 + $0x18] sm:$0xff] (!%p1685_p3)   ;;  %v2049_v9 = vld [vmem:[%s2830_s22 + $0x20] sm:$0xff] (!%p1685_p3)  }
 0x126   : > { %1793 = vmatprep.subr.bf16.mxu0 %v2386_v4 }
 0x129   : > { %1794 = vmatpush3.bf16.msra.mxu0 %v2031_v10  ;;  %v2050_v10 = vld [vmem:[%s2830_s22 + $0x28] sm:$0xff] (!%p1685_p3)  }
 0x12a   : > { %1795 = vmatprep.subr.bf16.mxu0 %v2386_v4 }
 0x12d   : > { %1796 = vmatpush3.bf16.msra.mxu0 %v2032_v11  ;;  %v2051_v11 = vld [vmem:[%s2830_s22 + $0x30] sm:$0xff] (!%p1685_p3)  }
 0x12e   : > { %1797 = vmatprep.subr.bf16.mxu0 %v2386_v4 }
 0x131   : > { %1798 = vmatpush3.bf16.msra.mxu0 %v2033_v12  ;;  %v2052_v12 = vld [vmem:[%s2830_s22 + $0x38] sm:$0xff] (!%p1685_p3)  }
 0x132   : > { %1799 = vmatprep.subr.bf16.mxu0 %v2386_v4 }
 0x135   : > { %1800 = vmatpush3.bf16.msra.mxu0 %v2034_v13  ;;  %v2053_v13 = vld [vmem:[%s2848_s2] sm:$0xff] (!%p1685_p3)  }
 0x136   : > { %1801 = vmatprep.subr.bf16.mxu0 %v2386_v4 }
 0x139   : > { %1802 = vmatpush3.bf16.msra.mxu0 %v2035_v29 }
 0x13a   : > { %1803 = vmatprep.subr.bf16.mxu0 %v2386_v4 }
 0x13d   : > { %1804 = vmatpush3.bf16.msra.mxu0 %v2036_v30 }
 0x13e   : > { %1829 = vmatprep.subr.bf16.mxu0 (!%p1685_p3), %v2388_v5 }
 0x1f3   : > { %v717_v15 = vpop.f32.mrb[0].mxu0 }
 0x1f4   : > { %v2887_v18 = vadd.f32 %v717_v15, %v664_v14  ;;  %v1781_v19 = vpop.f32.mrb[1].mxu0  ;;  %v2054_v14 = vld [vmem:[%s2848_s2 + $0x8] sm:$0xff] (!%p1685_p3)   ;;  %v2055_v15 = vld [vmem:[%s2848_s2 + $0x10] sm:$0xff] (!%p1685_p3)  }
 0x1f5   : > { %v720_v20 = vpop.f32.mrb[2].mxu0 }
 0x1f6   : > { %v731_v21 = vadd.f32 %v1664_v16, %v2887_v18  ;;  %v2890_v22 = vadd.f32 %v720_v20, %v665_v17  ;;  %v1782_v23 = vpop.f32.mrb[3].mxu0  ;;  %v2057_v17 = vld [vmem:[%s2848_s2 + $0x20] sm:$0xff] (!%p1685_p3)  }
 0x1f8   : > { %v732_v24 = vadd.f32 %v1664_v16, %v2890_v22  ;;  %v733_v25 = vmax.f32 %v731_v21, 0.0  ;;  %v1023_v1 = vpack.c.bf16 (!%p1685_p3), %v2890_v22, %v2887_v18  ;;  %v2056_v16 = vld [vmem:[%s2848_s2 + $0x18] sm:$0xff] (!%p1685_p3)  }
 0x1fa   : > { %v734_v26 = vmax.f32 %v732_v24, 0.0 }
 0x1fc   : > { %v737_v27 = vpack.c.bf16 %v734_v26, %v733_v25  ;;  %v2059_v25 = vld [vmem:[%s2848_s2 + $0x30] sm:$0xff] (!%p1685_p3)   ;;  %v2060_v26 = vld [vmem:[%s2848_s2 + $0x38] sm:$0xff] (!%p1685_p3)  }
 0x1fe   : > { %1784 = vmatpush3.bf16.msra.mxu1 %v737_v27  ;;  %v1687_v27 = vld [vmem:[%s2841_s9 + $0x1] ss:$0 sm:$0xff] (!%p1685_p3) }
 0x1ff   : > { %1809 = vmatprep.subr.bf16.mxu1 %v2386_v4 }
 0x201   : > { %1786 = vmatmul.mubr.msk.bf16.vlgmr.msra.gmra.mrb[0].mxu1 %vm743_vm3, %v2028_v28 }
 0x202   : > { %1825 = vmatprep.mubr.msk.bf16.mxu1 %vm2387_vm1, %v2386_v4  ;;  %1810 = vmatpush3.bf16.msra.mxu1 %v2037_v31 }
 0x203   : > { %1811 = vmatprep.subr.bf16.mxu1 %v2386_v4 }
 0x206   : > { %1812 = vmatpush3.bf16.msra.mxu1 %v2038_v32 }
 0x207   : > { %1813 = vmatprep.subr.bf16.mxu1 %v2386_v4 }
 0x20a   : > { %1814 = vmatpush3.bf16.msra.mxu1 %v2039_v33 }
 0x20b   : > { %1815 = vmatprep.subr.bf16.mxu1 %v2386_v4 }
 0x20e   : > { %1816 = vmatpush3.bf16.msra.mxu1 %v2040_v34 }
 0x20f   : > { %1817 = vmatprep.subr.bf16.mxu1 %v2386_v4 }
 0x212   : > { %1818 = vmatpush3.bf16.msra.mxu1 %v2041_v35 }
 0x213   : > { %1819 = vmatprep.subr.bf16.mxu1 %v2386_v4 }
 0x216   : > { %1820 = vmatpush3.bf16.msra.mxu1 %v2042_v36 }
 0x217   : > { %1821 = vmatprep.subr.bf16.mxu1 %v2386_v4 }
 0x21a   : > { %1822 = vmatpush3.bf16.msra.mxu1 %v2043_v44 }
 0x21b   : > { %1823 = vmatprep.subr.bf16.mxu1 %v2386_v4  ;;  %v2045_v4 = vld [vmem:[%s2830_s22] sm:$0xff] (!%p1685_p3)  }
 0x21e   : > { %1824 = vmatpush3.bf16.msra.mxu1 %v2044_v45 }
 0x21f   : > { %1835 = vmatprep.subr.bf16.mxu1 (!%p1685_p3), %v2388_v5 }
 0x2d4   : > { %v781_v37 = vpop.f32.mrb[0].mxu1 }
 0x2d5   : > { %v1787_v38 = vpop.f32.mrb[1].mxu1  ;;  %v788_v40 = vadd.f32 %v781_v37, %v2887_v18  ;;  %v2058_v18 = vld [vmem:[%s2848_s2 + $0x28] sm:$0xff] (!%p1685_p3)  }
 0x2d6   : > { %v784_v39 = vpop.f32.mrb[2].mxu1 }
 0x2d7   : > { %v789_v41 = vadd.f32 %v784_v39, %v2890_v22  ;;  %v1788_v42 = vpop.f32.mrb[3].mxu1 }
 0x2d9   : > { %v790_v43 = vpack.c.bf16 %v789_v41, %v788_v40 }
 0x2db   : > { %1806 = vmatmul.mubr.bf16.vlgmr.msra.gmra.mrb[4].mxu0 %v790_v43 }
 0x2dc   : > { %1830 = vmatpush3.bf16.msra.mxu0 (!%p1685_p3), %v1023_v1  ;;  %1831 = vmatprep.mubr.msk.bf16.mxu0 (!%p1685_p3), %vm2389_vm4, %v2388_v5 }
 0x2dd   : > { %1855 = vmatprep.subr.bf16.mxu0 (!%p1685_p3), %v2388_v5 }
 0x2e3   : > { %1832 = vmatmul.mubr.msk.bf16.vlgmr.msra.gmra.mrb[0].mxu0 (!%p1685_p3), %vm743_vm3, %v1022_v2 }
 0x2e4   : > { %1871 = vmatprep.mubr.msk.bf16.mxu0 (!%p1685_p3), %vm2389_vm4, %v2388_v5  ;;  %1856 = vmatpush3.bf16.msra.mxu0 (!%p1685_p3), %v2053_v13 }
 0x2e5   : > { %1857 = vmatprep.subr.bf16.mxu0 (!%p1685_p3), %v2388_v5 }
 0x2e8   : > { %1858 = vmatpush3.bf16.msra.mxu0 (!%p1685_p3), %v2054_v14 }
 0x2e9   : > { %1859 = vmatprep.subr.bf16.mxu0 (!%p1685_p3), %v2388_v5 }
 0x2ec   : > { %1860 = vmatpush3.bf16.msra.mxu0 (!%p1685_p3), %v2055_v15 }
 0x2ed   : > { %1861 = vmatprep.subr.bf16.mxu0 (!%p1685_p3), %v2388_v5 }
 0x2f0   : > { %1862 = vmatpush3.bf16.msra.mxu0 (!%p1685_p3), %v2056_v16 }
 0x2f1   : > { %1863 = vmatprep.subr.bf16.mxu0 (!%p1685_p3), %v2388_v5 }
 0x2f4   : > { %1864 = vmatpush3.bf16.msra.mxu0 (!%p1685_p3), %v2057_v17 }
 0x2f5   : > { %1865 = vmatprep.subr.bf16.mxu0 (!%p1685_p3), %v2388_v5 }
 0x2f8   : > { %1866 = vmatpush3.bf16.msra.mxu0 (!%p1685_p3), %v2058_v18 }
 0x2f9   : > { %1867 = vmatprep.subr.bf16.mxu0 (!%p1685_p3), %v2388_v5 }
 0x2fc   : > { %1868 = vmatpush3.bf16.msra.mxu0 (!%p1685_p3), %v2059_v25 }
 0x2fd   : > { %1869 = vmatprep.subr.bf16.mxu0 (!%p1685_p3), %v2388_v5 }
 0x300   : > { %1870 = vmatpush3.bf16.msra.mxu0 (!%p1685_p3), %v2060_v26 }
 0x3ae   : > { %v894_v47 = vpop.f32.mrb[4].mxu0 }
 0x3af   : > { %v895_v48 = vadd.f32 %v1667_v46, %v894_v47  ;;  %v1807_v49 = vpop.f32.mrb[5].mxu0 }
 0x3b0   : > { %v897_v50 = vpop.f32.mrb[6].mxu0 }
 0x3b1   : > { %v898_v51 = vadd.f32 %v1667_v46, %v897_v50  ;;  %v1808_v52 = vpop.f32.mrb[7].mxu0  ;;  %v901_v53 = vmax.f32 %v895_v48, 0.0 }
 0x3b3   : > { %v902_v54 = vmax.f32 %v898_v51, 0.0 }
 0x3b5   : > { %v903_v55 = vpack.c.bf16 %v902_v54, %v901_v53 }
 0x3b6   : > { %v1061_v19 = vpop.f32.mrb[0].mxu0 (!%p1685_p3) }
 0x3b7   : > { %1826 = vmatmul.mubr.bf16.vlgmr.msra.gmra.mrb[4].mxu1 %v903_v55  ;;  %v1062_v20 = vadd.f32 (!%p1685_p3), %v1061_v19, %v2858_v3  ;;  %v1833_v21 = vpop.f32.mrb[1].mxu0 (!%p1685_p3)  ;;  %v1696_v3 = vld [vmem:[%s2846_s11 + $0x2] ss:$0 sm:$0xff] (!%p1685_p3) }
 0x3b8   : > { %1836 = vmatpush3.bf16.msra.mxu1 (!%p1685_p3), %v2045_v4  ;;  %1851 = vmatprep.mubr.msk.bf16.mxu1 (!%p1685_p3), %vm2389_vm4, %v2388_v5  ;;  %v1064_v22 = vpop.f32.mrb[2].mxu0 (!%p1685_p3) }
 0x3b9   : > { %1837 = vmatprep.subr.bf16.mxu1 (!%p1685_p3), %v2388_v5  ;;  %v1067_v23 = vpack.c.bf16 (!%p1685_p3), %v1062_v20, %v1062_v20  ;;  %v1834_v24 = vpop.f32.mrb[3].mxu0 (!%p1685_p3) }
 0x3bc   : > { %1838 = vmatpush3.bf16.msra.mxu1 (!%p1685_p3), %v2046_v6 }
 0x3bd   : > { %1839 = vmatprep.subr.bf16.mxu1 (!%p1685_p3), %v2388_v5 }
 0x3c0   : > { %1840 = vmatpush3.bf16.msra.mxu1 (!%p1685_p3), %v2047_v7 }
 0x3c1   : > { %1841 = vmatprep.subr.bf16.mxu1 (!%p1685_p3), %v2388_v5 }
 0x3c4   : > { %1842 = vmatpush3.bf16.msra.mxu1 (!%p1685_p3), %v2048_v8 }
 0x3c5   : > { %1843 = vmatprep.subr.bf16.mxu1 (!%p1685_p3), %v2388_v5 }
 0x3c8   : > { %1844 = vmatpush3.bf16.msra.mxu1 (!%p1685_p3), %v2049_v9 }
 0x3c9   : > { %1845 = vmatprep.subr.bf16.mxu1 (!%p1685_p3), %v2388_v5 }
 0x3cc   : > { %1846 = vmatpush3.bf16.msra.mxu1 (!%p1685_p3), %v2050_v10 }
 0x3cd   : > { %1847 = vmatprep.subr.bf16.mxu1 (!%p1685_p3), %v2388_v5 }
 0x3d0   : > { %1848 = vmatpush3.bf16.msra.mxu1 (!%p1685_p3), %v2051_v11 }
 0x3d1   : > { %1849 = vmatprep.subr.bf16.mxu1 (!%p1685_p3), %v2388_v5 }
 0x3d4   : > { %1850 = vmatpush3.bf16.msra.mxu1 (!%p1685_p3), %v2052_v12 }
 0x3d7   : > { %1852 = vmatmul.mubr.bf16.vlgmr.msra.gmra.mrb[0].mxu1 (!%p1685_p3), %v1067_v23 }
 0x487   : > { %1017 = sbr.rel (%p1685_p3) target bundleno = 1418 (0x58a), region = 108 }
 0x48a   : > { %v1007_v57 = vpop.f32.mrb[4].mxu1 }
 0x48b   : > { %v2919_v58 = vadd.f32 %v1676_v56, %v1007_v57  ;;  %v1827_v59 = vpop.f32.mrb[5].mxu1 }
 0x48c   : > { %v1010_v60 = vpop.f32.mrb[6].mxu1 }
 0x48d   : > { %v2921_v61 = vadd.f32 %v1676_v56, %v1010_v60  ;;  %v1828_v62 = vpop.f32.mrb[7].mxu1  ;;  %v1018_v63 = vmax.f32 (!%p1685_p3), %v2919_v58, 0.0 }
 0x48f   : > { %v1019_v0 = vmax.f32 %v2921_v61, 0.0  ;;  %1020 = vst [vmem:[#allocation2] sm:$0xff] %v1018_v63 }
 0x491   : > { %1021 = vst [vmem:[#allocation2 + $0x8] sm:$0xff] %v1019_v0 }
 0x4aa   : > { %v1171_v28 = vpop.f32.mrb[0].mxu1 }
 0x4ab   : > { %v1172_v29 = vadd.f32 %v1687_v27, %v1171_v28  ;;  %v1853_v30 = vpop.f32.mrb[1].mxu1 }
 0x4ac   : > { %v1174_v31 = vpop.f32.mrb[2].mxu1 }
 0x4ad   : > { %v1177_v32 = vmax.f32 %v1172_v29, 0.0  ;;  %v1854_v33 = vpop.f32.mrb[3].mxu1 }
 0x4af   : > { %v1178_v34 = vpack.c.bf16 %v1177_v32, %v1177_v32 }
 0x4b1   : > { %1872 = vmatmul.mubr.bf16.vlgmr.msra.gmra.mrb[4].mxu0 %v1178_v34 }
 0x584   : > { %v1282_v35 = vpop.f32.mrb[4].mxu0 }
 0x585   : > { %v1283_v36 = vadd.f32 %v1696_v3, %v1282_v35  ;;  %v1873_v37 = vpop.f32.mrb[5].mxu0 }
 0x586   : > { %v1285_v38 = vpop.f32.mrb[6].mxu0 }
 0x587   : > { %v1288_v39 = vmax.f32 %v1283_v36, 0.0  ;;  %v1874_v40 = vpop.f32.mrb[7].mxu0 }
 0x589   : > { %1289 = vst [vmem:[#allocation3] sm:$0xff] %v1288_v39 }
 0x58a PF: > { %s3120_s12 = sld [smem:[#allocation26_spill]] }
 0x590   : > { %p1705_p4 = scmp.ne.s32.totalorder %s3120_s12, 4 }
 0x591   : > { %v1294_v41 = vpack.c.bf16 (!%p1705_p4), %v2921_v61, %v2919_v58  ;;  %s3121_s26 = sld [smem:[#allocation36_spill]] (!%p1705_p4)  ;;  %v2390_v43 = vmov (!%p1705_p4), 0.0   ;;  %vm2391_vm5 = vmmov (!%p1705_p4), 0   ;;  %v2062_v44 = vld [vmem:[#allocation9] sm:$0xff] (!%p1705_p4)   ;;  %v1293_v45 = vld [vmem:[#allocation7] sm:$0xf] (!%p1705_p4) }
 0x592   : > { %1292 = sbr.rel (%p1705_p4) target bundleno = 1861 (0x745), region = 112  ;;  %1875 = vmatprep.subr.bf16.mxu0 (!%p1705_p4), %v2390_v43  ;;  %1877 = vmatprep.mubr.msk.bf16.mxu0 (!%p1705_p4), %vm2391_vm5, %v2390_v43  ;;  %v2392_v46 = vmov (!%p1705_p4), 0   ;;  %v2063_v47 = vld [vmem:[#allocation9 + $0x8] sm:$0xff] (!%p1705_p4)   ;;  %v2064_v48 = vld [vmem:[#allocation9 + $0x10] sm:$0xff] (!%p1705_p4)   ;;  %v2065_v49 = vld [vmem:[#allocation9 + $0x18] sm:$0xff] (!%p1705_p4)   ;;  %s3122_s16 = sld [smem:[#allocation37_spill]] (!%p1705_p4) }
 0x593   : > { %1876 = vmatpush3.bf16.msra.mxu0 (!%p1705_p4), %v1294_v41  ;;  %2061 = vset.pattern.permute.xlu0 (!%p1705_p4), %v2392_v46  ;;  %v2066_v50 = vld [vmem:[#allocation9 + $0x20] sm:$0xff] (!%p1705_p4)   ;;  %v2067_v51 = vld [vmem:[#allocation9 + $0x28] sm:$0xff] (!%p1705_p4)   ;;  %v2068_v52 = vld [vmem:[#allocation9 + $0x30] sm:$0xff] (!%p1705_p4)  }
 0x594   : > { %1881 = vmatprep.subr.bf16.mxu1 (!%p1705_p4), %v2390_v43  ;;  %1897 = vmatprep.mubr.msk.bf16.mxu1 (!%p1705_p4), %vm2391_vm5, %v2390_v43  ;;  %v2069_v53 = vld [vmem:[#allocation9 + $0x38] sm:$0xff] (!%p1705_p4)  }
 0x595   : > { %1882 = vmatpush3.bf16.msra.mxu1 (!%p1705_p4), %v2062_v44 }
 0x596   : > { %1878 = vmatmul.mubr.msk.bf16.vlgmr.msra.gmra.mrb[0].mxu0 (!%p1705_p4), %vm743_vm3, %v1293_v45  ;;  %1883 = vmatprep.subr.bf16.mxu1 (!%p1705_p4), %v2390_v43 }
 0x597   : > { %v1338_v42 = vld [vmem:[%s3121_s26] sm:$0xff] (!%p1705_p4) }
 0x598   : > { %1341 = vperm.xlu0 (!%p1705_p4), %2061, %v1338_v42   ;;  %v1707_v61 = vld [vmem:[%s3122_s16] ss:$0 sm:$0xff] (!%p1705_p4) }
 0x599   : > { %1884 = vmatpush3.bf16.msra.mxu1 %v2063_v47 }
 0x59a   : > { %1885 = vmatprep.subr.bf16.mxu1 %v2390_v43 }
 0x59d   : > { %1886 = vmatpush3.bf16.msra.mxu1 %v2064_v48 }
 0x59e   : > { %1887 = vmatprep.subr.bf16.mxu1 %v2390_v43 }
 0x5a1   : > { %1888 = vmatpush3.bf16.msra.mxu1 %v2065_v49 }
 0x5a2   : > { %1889 = vmatprep.subr.bf16.mxu1 %v2390_v43 }
 0x5a5   : > { %1890 = vmatpush3.bf16.msra.mxu1 %v2066_v50 }
 0x5a6   : > { %1891 = vmatprep.subr.bf16.mxu1 %v2390_v43 }
 0x5a9   : > { %1892 = vmatpush3.bf16.msra.mxu1 %v2067_v51 }
 0x5aa   : > { %1893 = vmatprep.subr.bf16.mxu1 %v2390_v43 }
 0x5ad   : > { %1894 = vmatpush3.bf16.msra.mxu1 %v2068_v52 }
 0x5ae   : > { %1895 = vmatprep.subr.bf16.mxu1 %v2390_v43 }
 0x5b1   : > { %1896 = vmatpush3.bf16.msra.mxu1 %v2069_v53 }
 0x617   : > { %v1342_v54 = vpop.permute.xlu0 %1341 }
 0x669   : > { %v1332_v55 = vpop.f32.mrb[0].mxu0 }
 0x66a   : > { %v1344_v56 = vmul.f32 %v1342_v54, %v1332_v55  ;;  %v1879_v57 = vpop.f32.mrb[1].mxu0 }
 0x66b   : > { %v1335_v58 = vpop.f32.mrb[2].mxu0 }
 0x66c   : > { %v1345_v59 = vpack.c.bf16 %v1344_v56, %v1344_v56  ;;  %v1880_v60 = vpop.f32.mrb[3].mxu0 }
 0x66e   : > { %1898 = vmatmul.mubr.bf16.vlgmr.msra.gmra.mrb[0].mxu1 %v1345_v59 }
 0x741   : > { %v1451_v62 = vpop.f32.mrb[0].mxu1 }
 0x742   : > { %v1452_v63 = vadd.f32 %v1707_v61, %v1451_v62  ;;  %v1899_v0 = vpop.f32.mrb[1].mxu1 }
 0x743   : > { %v1454_v1 = vpop.f32.mrb[2].mxu1 }
 0x744   : > { %1457 = vst [vmem:[#allocation16] sm:$0xff] %v1452_v63  ;;  %v1900_v2 = vpop.f32.mrb[3].mxu1 }
 0x745 PF: > { %s2393_s17 = smov [#allocation16]  }
 0x746   : > { %s1465_s6 = sshll.u32 %s2393_s17, 4  ;;  %s1466_s6 = int_to_ptr.vmem [resolvable:$true] %s1465_s6 }
 0x747   : > { %s2274_s27 = scalar_lea.vmem %s1466_s6, 128  ;;  %p2281_p2 = scmp.lt.s32.totalorder %s1466_s6, %s1466_s6 }
 0x748   : > { %p2275_p10 = scmp.ne.s32.totalorder %s1466_s6, %s2274_s27  ;;  %p2282_p6 = scmp.lt.s32.totalorder %s2274_s27, %s2274_s27 }
 0x74a   : > { %p2276_p8 = pnand %p2275_p10, %p1685_p3  ;;  %p2283_p0 = por %p2282_p6, %p2281_p2 }
 0x74c   : > { %p2277_p1 = pneg %p2276_p8 }
 0x74e   : > { %p2284_p12 = pnand %p2283_p0, %p2277_p1 }
 0x750   : > { %2287 = shalt.err (!%p2284_p12)
}
 0x751   : > { %s3124_s0 = sld [smem:[#allocation42_spill]] }
 0x757   : > { %s2288_s23 = scalar_lea.hbm %s3124_s0, 128 }
 0x758   : > { %p2289_p7 = scmp.ne.s32.totalorder %s3124_s0, %s2288_s23  ;;  %p2294_p5 = scmp.lt.u32.totalorder %s2288_s23, %s3124_s0 }
 0x75a   : > { %p2290_p13 = pnand %p2289_p7, %p1685_p3 }
 0x75c   : > { %p2291_p9 = pneg %p2290_p13 }
 0x75e   : > { %p2296_p11 = pnand %p2294_p5, %p2291_p9 }
 0x760   : > { %2299 = shalt.err (!%p2296_p11)
}
 0x761   : > { %1922 = dma.vmem_to_hbm [thread:$0]  (%p1685_p3), %s1466_s6, 128, %s3124_s0, [#allocation6]  }
 0x762   : > { %2345 = dma.done.wait (%p1685_p3), [#allocation6], 128  }
 0x763   : > { %2347 = vsyncadd (%p1685_p3), [#allocation6], 4294967168 }
 0x764 PF: > { %s3125_s14 = sld [smem:[#allocation30_spill]]  ;;  %s3126_s25 = sld [smem:[#allocation22_spill]] }
 0x765   : > { %s3127_s26 = sld [smem:[#allocation23_spill]]  ;;  %s3128_s27 = sld [smem:[#allocation32_spill]] }
 0x766   : > { %s3129_s28 = sld [smem:[#allocation24_spill]]  ;;  %s3130_s29 = sld [smem:[#allocation25_spill]] }
 0x767   : > { %s3131_s30 = sld [smem:[#allocation31_spill]] }
 0x76a   : > { %p29_p4 = scmp.ge.s32.totalorder %s3125_s14, 7  }
 0x76c   :  { %31 = sbr.rel (!%p29_p4) target bundleno = 21 (0x15), region = 175 }
 0x773   :  { %1478 = vsyncpa [#allocation5], 1 }
 0x774   :  { %1480 = vsyncpa [#allocation5 + $0x1], 1 }
 0x775   :  { %1481 = vsyncpa [#allocation8], 1 }
 0x776   :  { %1482 = vsyncpa [#allocation11], 1 }
 0x777   :  { %1484 = vsyncpa [#allocation11 + $0x1], 1 }
 0x778   :  { %1485 = vsyncpa [#allocation14], 1 }
 0x779   :  { %1487 = vsyncpa [#allocation14 + $0x1], 1 }
 0x77a   :  { %1488 = vsyncpa [#allocation6], 1 }
 0x77b   :  { %1490 = vsyncpa [#allocation6 + $0x1], 1 }

// kernel: tpu_custom_call.1
= control target key start
LH: loop header
LB: loop body
LE: loop exit
PB: predicated region body
PF: predicated region fallthrough
CT: control target
= control target key end

     0   :  { %s3004_s0 = inlined_call_operand.vmem [shape: f32[16,128], index: 0, kind: input, shape index: {}]   ;;  %s3005_s1 = inlined_call_operand.hbm [shape: bf16[16,16], index: 1, kind: input, shape index: {}]   ;;  %s3006_s2 = inlined_call_operand.vmem [shape: bf16[16,8], index: 2, kind: input, shape index: {}]   ;;  %s3007_s3 = inlined_call_operand.hbm [shape: bf16[8,16], index: 3, kind: input, shape index: {}]   ;;  %s3008_s4 = inlined_call_operand.vmem [shape: f32[8,1], index: 4, kind: input, shape index: {}]   ;;  %s3009_s5 = inlined_call_operand.hbm [shape: bf16[128,128], index: 5, kind: input, shape index: {}]   ;;  %s3010_s6 = inlined_call_operand.vmem [shape: f32[1,128], index: 6, kind: input, shape index: {}]   ;;  %s3011_s7 = inlined_call_operand.hbm [shape: bf16[5,128,128], index: 7, kind: input, shape index: {}]   ;;  %s3012_s8 = inlined_call_operand.hbm [shape: bf16[5,128,128], index: 8, kind: input, shape index: {}]   ;;  %s3013_s9 = inlined_call_operand.hbm [shape: bf16[4,128,128], index: 9, kind: input, shape index: {}]   ;;  %s3014_s10 = inlined_call_operand.hbm [shape: bf16[4,128,128], index: 10, kind: input, shape index: {}]   ;;  %s3015_s11 = inlined_call_operand.vmem [shape: f32[5,2,128], index: 11, kind: input, shape index: {}]   ;;  %s3016_s12 = inlined_call_operand.vmem [shape: f32[5,3,128], index: 12, kind: input, shape index: {}]   ;;  %s3017_s13 = inlined_call_operand.hbm [shape: f32[8,128], index: 13, kind: output, shape index: {}]  }
   0x1   :  { %3053 = sst [smem:[#allocation33_spill]] %s3004_s0 }
   0x2   :  { %3054 = sst [smem:[#allocation34_spill]] %s3006_s2 }
   0x3   :  { %3055 = sst [smem:[#allocation35_spill]] %s3007_s3 }
   0x4   :  { %3056 = sst [smem:[#allocation36_spill]] %s3008_s4 }
   0x5   :  { %3057 = sst [smem:[#allocation37_spill]] %s3010_s6 }
   0x6   :  { %3058 = sst [smem:[#allocation38_spill]] %s3011_s7 }
   0x7   :  { %3059 = sst [smem:[#allocation39_spill]] %s3013_s9 }
   0x8   :  { %3060 = sst [smem:[#allocation40_spill]] %s3015_s11 }
   0x9   :  { %3061 = sst [smem:[#allocation41_spill]] %s3016_s12 }
   0xa   :  { %3062 = sst [smem:[#allocation42_spill]] %s3017_s13 }
   0xb   :  { %18 = vsyncpa [#allocation5], 0 }
   0xc   :  { %19 = vsyncpa [#allocation8], 0 }
   0xd   :  { %20 = vsyncpa [#allocation11], 0 }
   0xe   :  { %22 = vsyncpa [#allocation11 + $0x1], 0 }
   0xf   :  { %23 = vsyncpa [#allocation14], 0 }
  0x10   :  { %25 = vsyncpa [#allocation14 + $0x1], 0 }
  0x11   :  { %26 = vsyncpa [#allocation6], 0  ;;  %s2464_s25 = smov 0   ;;  %s2466_s26 = smov 0  }
  0x12   :  { %s2468_s27 = smov 0   ;;  %s2470_s28 = smov 0  }
  0x13   :  { %s2472_s29 = smov 0   ;;  %s2474_s30 = smov 0  }
  0x14   :  { %s2476_s14 = smov 0  }
  0x15 LB: > { %3063 = sst [smem:[#allocation22_spill]] %s2354_s26  ;;  %s2496_s15 = sadd.s32 4294967295, %s2374_s14   ;;  %s2374_s14 = sphi %s2476_s14, %s3125_s14   ;;  %s2370_s30 = sphi %s2474_s30, %s3131_s30   ;;  %s2366_s29 = sphi %s2472_s29, %s3130_s29   ;;  %s2362_s28 = sphi %s2470_s28, %s3129_s28   ;;  %s2358_s27 = sphi %s2468_s27, %s3128_s27   ;;  %s2354_s26 = sphi %s2466_s26, %s3127_s26   ;;  %s2350_s25 = sphi %s2464_s25, %s3126_s25  }
  0x16   : > { %3064 = sst [smem:[#allocation23_spill]] %s2358_s27  ;;  %p199_p0 = scmp.ne.s32.totalorder %s2366_s29, %s2362_s28 }
  0x17   : > { %3065 = sst [smem:[#allocation24_spill]] %s2366_s29  ;;  %p3019_p1 = scmp.eq.s32.totalorder %s2496_s15, 0 }
  0x18   : > { %3066 = sst [smem:[#allocation25_spill]] %s2370_s30  ;;  %p255_p2 = scmp.ne.s32.totalorder %s2354_s26, %s2350_s25 }
  0x19   : > { %3067 = sst [smem:[#allocation26_spill]] %s2496_s15  ;;  %p1634_p3 = scmp.ge.s32.totalorder %s2374_s14, 1 }
  0x1a   : > { %p369_p4 = scmp.lt.s32.totalorder %s2374_s14, 6  ;;  %p2505_p5 = por %p3019_p1, %p199_p0 }
  0x1b   : > { %p2511_p6 = por %p255_p2, %p3019_p1  ;;  %s2376_s19 = smov [#allocation7]  }
  0x1c   : > { %s3068_s16 = scalar_select %p2505_p5, 1, 0 }
  0x1d   : > { %s3070_s17 = scalar_select %p2511_p6, 1, 0 }
  0x1e   : > { %3069 = sst [smem:[#allocation27_spill]] %s3068_s16  ;;  %p2515_p7 = pnand %p1634_p3, %p369_p4 }
  0x1f   : > { %3071 = sst [smem:[#allocation28_spill]] %s3070_s17  ;;  %s401_s20 = sshll.u32 %s2376_s19, 4  ;;  %s402_s20 = int_to_ptr.vmem [resolvable:$true] %s401_s20 }
  0x20   : > { %s3072_s18 = scalar_select %p2515_p7, 1, 0 }
  0x21   : > { %p1925_p9 = pneg %p2515_p7  ;;  %s3075_s3 = sld [smem:[#allocation35_spill]] }
  0x22   : > { %3073 = sst [smem:[#allocation29_spill]] %s3072_s18 }
  0x23   : > { %p2524_p10 = pnand %p1925_p9, %p3019_p1 }
  0x25   : > { %s3074_s21 = scalar_select %p2524_p10, 1, 0 }
  0x26   : > { %p2539_p0 = pneg %p2524_p10 }
  0x27   : > { %s2070_s24 = scalar_lea.hbm %s3075_s3, 64 }
  0x28   : > { %p2071_p13 = scmp.ne.s32.totalorder %s3075_s3, %s2070_s24  ;;  %p2077_p4 = scmp.lt.u32.totalorder %s2070_s24, %s3075_s3 }
  0x2a   : > { %p2073_p2 = pnand %p2539_p0, %p2071_p13 }
  0x2c   : > { %p2074_p3 = pneg %p2073_p2 }
  0x2e   : > { %p2079_p9 = pnand %p2077_p4, %p2074_p3 }
  0x30   : > { %2082 = shalt.err (!%p2079_p9)
}
  0x31   : > { %s2083_s22 = scalar_lea.vmem %s402_s20, 64  ;;  %p2091_p11 = scmp.lt.s32.totalorder %s402_s20, %s402_s20 }
  0x32   : > { %p2084_p8 = scmp.ne.s32.totalorder %s402_s20, %s2083_s22  ;;  %p2092_p6 = scmp.lt.s32.totalorder %s2083_s22, %s2083_s22 }
  0x34   : > { %p2086_p1 = pnand %p2084_p8, %p2539_p0  ;;  %p2093_p5 = por %p2092_p6, %p2091_p11 }
  0x36   : > { %p2087_p12 = pneg %p2086_p1 }
  0x38   : > { %p2094_p7 = pnand %p2093_p5, %p2087_p12 }
  0x3a   : > { %2097 = shalt.err (!%p2094_p7)
}
  0x3b   : > { %1931 = dma.hbm_to_vmem [thread:$0]  (!%p2524_p10), %s3075_s3, 64, %s402_s20, [#allocation8]  }
  0x3c   : > { %p3077_p1 = scmp.ne.s32.totalorder %s2370_s30, %s2366_s29  ;;  %p3078_p6 = scmp.eq.s32.totalorder %s2374_s14, 0 }
  0x3d   : > { %p3028_p7 = scmp.lt.s32.totalorder %s2374_s14, 5  ;;  %s433_s13 = sand.u32 1, %s2370_s30  }
  0x3e   : > { %p195_p5 = por %p3078_p6, %p3077_p1  ;;  %s2563_s24 = sshll.u32 %s433_s13, 6 }
  0x3f   : > { %s1720_s28 = sshll.u32 %s2374_s14, 10  ;;  %s3079_s7 = sld [smem:[#allocation38_spill]] }
  0x40   : > { %s435_s4 = scalar_lea.vmem [#allocation10], %s2563_s24  ;;  %p2576_p8 = pnand %p3028_p7, %p195_p5 }
  0x41   : > { %s442_s20 = sshll.u32 %s435_s4, 4  ;;  %s2584_s23 = scalar_lea.hbm %s3012_s8, %s1720_s28  ;;  %s2572_s20 = int_to_ptr.vmem [resolvable:$true] %s442_s20 }
  0x42   : > { %s3080_s6 = scalar_select %p2576_p8, 1, 0 }
  0x43   : > { %s3081_s2 = sand.u32 1, %s2374_s14   ;;  %p3038_p12 = pneg %p2576_p8 }
  0x44   : > { %s2588_s0 = scalar_lea.sflag [#allocation11], %s3081_s2 }
  0x45   : > { %s2569_s25 = scalar_lea.hbm %s3079_s7, %s1720_s28  ;;  %s2103_s13 = scalar_lea.hbm %s3079_s7, 5120 }
  0x46   : > { %s2098_s12 = scalar_lea.hbm %s2569_s25, 1024  ;;  %p2104_p3 = scmp.lt.u32.totalorder %s2569_s25, %s3079_s7 }
  0x47   : > { %p2099_p11 = scmp.ne.s32.totalorder %s2569_s25, %s2098_s12  ;;  %p2105_p4 = scmp.lt.u32.totalorder %s2103_s13, %s2098_s12 }
  0x48   : > { %p2107_p1 = scmp.lt.u32.totalorder %s2098_s12, %s2569_s25 }
  0x49   : > { %p2101_p13 = pnand %p3038_p12, %p2099_p11  ;;  %p2106_p9 = por %p2105_p4, %p2104_p3 }
  0x4b   : > { %p2102_p2 = pneg %p2101_p13  ;;  %p2108_p6 = por %p2107_p1, %p2106_p9 }
  0x4d   : > { %p2109_p5 = pnand %p2108_p6, %p2102_p2 }
  0x4f   : > { %2112 = shalt.err (!%p2109_p5)
}
  0x50   : > { %s2113_s2 = scalar_lea.vmem %s2572_s20, 1024  ;;  %s2377_s3 = smov [#allocation10]  }
  0x51   : > { %p2114_p11 = scmp.ne.s32.totalorder %s2572_s20, %s2113_s2  ;;  %s2118_s11 = sshll.u32 %s2377_s3, 4  ;;  %s2119_s11 = int_to_ptr.vmem [resolvable:$false] %s2118_s11 }
  0x52   : > { %s2120_s16 = scalar_lea.vmem %s2119_s11, 2048  ;;  %p2121_p10 = scmp.lt.s32.totalorder %s2572_s20, %s2119_s11 }
  0x53   : > { %p2116_p13 = pnand %p2114_p11, %p3038_p12  ;;  %p2122_p3 = scmp.lt.s32.totalorder %s2120_s16, %s2113_s2 }
  0x55   : > { %p2117_p7 = pneg %p2116_p13  ;;  %p2123_p4 = por %p2122_p3, %p2121_p10 }
  0x57   : > { %p2124_p9 = pnand %p2123_p4, %p2117_p7 }
  0x59   : > { %2127 = shalt.err (!%p2124_p9)
}
  0x5a   : > { %s3031_s12 = smov 64   ;;  %s3033_s17 = smov 4  }
  0x5b   : > { %1938 = dma.hbm_to_vmem [thread:$0]  (!%p2576_p8), %s2569_s25, 1024, %s2572_s20, %s2588_s0, %s3031_s12, %s3031_s12, %s3033_s17  }
  0x5c   : > { %s456_s28 = scalar_lea.vmem [#allocation12], %s2563_s24  ;;  %s2623_s22 = sadd.s32 1, %s2374_s14  }
  0x5d   : > { %s2620_s13 = sshll.u32 %s456_s28, 4  ;;  %3082 = sst [smem:[#allocation30_spill]] %s2623_s22  ;;  %s2701_s13 = int_to_ptr.vmem [resolvable:$true] %s2620_s13 }
  0x5e   : > { %s183_s4 = ssub.s32 %s2374_s14, %s2623_s22  ;;  %p235_p10 = scmp.lt.s32.totalorder %s2374_s14, 3 }
  0x5f   : > { %p184_p7 = scmp.eq.s32.totalorder %s183_s4, 0  ;;  %p237_p2 = scmp.lt.s32.totalorder %s2623_s22, 3 }
  0x60   : > { %s2630_s2 = scalar_select %p235_p10, %s2374_s14, 3 }
  0x61   : > { %s3083_s3 = sadd.s32 1, %s2370_s30  ;;  %s242_s20 = sadd.s32 1, %s2358_s27 }
  0x62   : > { %s2635_s24 = scalar_select %p184_p7, %s2370_s30, %s3083_s3  }
  0x63   : > { %s238_s25 = scalar_select %p237_p2, %s2623_s22, 3 }
  0x64   : > { %3084 = sst [smem:[#allocation31_spill]] %s2635_s24  ;;  %p249_p1 = scmp.ne.s32.totalorder %s2358_s27, %s2354_s26 }
  0x65   : > { %s239_s11 = ssub.s32 %s2630_s2, %s238_s25  ;;  %p3085_p5 = scmp.eq.s32.totalorder %s2374_s14, 0 }
  0x66   : > { %p240_p6 = scmp.eq.s32.totalorder %s239_s11, 0  ;;  %s475_s16 = sand.u32 1, %s2358_s27  }
  0x67   : > { %p251_p11 = por %p249_p1, %p3085_p5  ;;  %s3035_s28 = sshll.u32 %s2630_s2, 10 }
  0x68   : > { %s2647_s4 = scalar_select %p240_p6, %s2358_s27, %s242_s20  }
  0x69   : > { %s2649_s12 = sshll.u32 %s475_s16, 6  ;;  %s3087_s9 = sld [smem:[#allocation39_spill]] }
  0x6a   : > { %3086 = sst [smem:[#allocation32_spill]] %s2647_s4  ;;  %p3088_p13 = scmp.lt.s32.totalorder %s2374_s14, 5 }
  0x6b   : > { %s477_s20 = scalar_lea.vmem [#allocation13], %s2649_s12  ;;  %s3090_s16 = sand.u32 1, %s2374_s14  }
  0x6c   : > { %p2660_p3 = pnand %p3088_p13, %p251_p11  ;;  %s486_s11 = sshll.u32 %s477_s20, 4  ;;  %s2665_s11 = int_to_ptr.vmem [resolvable:$true] %s486_s11 }
  0x6d   : > { %s2669_s7 = scalar_lea.sflag [#allocation14], %s3090_s16 }
  0x6e   : > { %s3089_s25 = scalar_select %p2660_p3, 1, 0 }
  0x6f   : > { %s2656_s3 = scalar_lea.hbm %s3087_s9, %s3035_s28  ;;  %p3050_p9 = pneg %p2660_p3 }
  0x70   : > { %s2128_s17 = scalar_lea.hbm %s2656_s3, 1024  ;;  %s2133_s30 = scalar_lea.hbm %s3087_s9, 4096 }
  0x71   : > { %p2129_p4 = scmp.ne.s32.totalorder %s2656_s3, %s2128_s17  ;;  %p2134_p2 = scmp.lt.u32.totalorder %s2656_s3, %s3087_s9 }
  0x72   : > { %p2135_p1 = scmp.lt.u32.totalorder %s2133_s30, %s2128_s17  ;;  %p2137_p5 = scmp.lt.u32.totalorder %s2128_s17, %s2656_s3 }
  0x73   : > { %p2131_p10 = pnand %p3050_p9, %p2129_p4 }
  0x74   : > { %p2136_p6 = por %p2135_p1, %p2134_p2 }
  0x75   : > { %p2132_p7 = pneg %p2131_p10 }
  0x76   : > { %p2138_p11 = por %p2137_p5, %p2136_p6 }
  0x78   : > { %p2139_p13 = pnand %p2138_p11, %p2132_p7 }
  0x7a   : > { %2142 = shalt.err (!%p2139_p13)
}
  0x7b   : > { %s2143_s14 = scalar_lea.vmem %s2665_s11, 1024  ;;  %s2380_s24 = smov [#allocation13]  }
  0x7c   : > { %p2144_p4 = scmp.ne.s32.totalorder %s2665_s11, %s2143_s14  ;;  %s2148_s28 = sshll.u32 %s2380_s24, 4  ;;  %s2149_s28 = int_to_ptr.vmem [resolvable:$false] %s2148_s28 }
  0x7d   : > { %s2150_s27 = scalar_lea.vmem %s2149_s28, 2048  ;;  %p2151_p8 = scmp.lt.s32.totalorder %s2665_s11, %s2149_s28 }
  0x7e   : > { %p2146_p10 = pnand %p2144_p4, %p3050_p9  ;;  %p2152_p2 = scmp.lt.s32.totalorder %s2150_s27, %s2143_s14 }
  0x80   : > { %p2147_p12 = pneg %p2146_p10  ;;  %p2153_p1 = por %p2152_p2, %p2151_p8 }
  0x82   : > { %p2154_p6 = pnand %p2153_p1, %p2147_p12 }
  0x84   : > { %2157 = shalt.err (!%p2154_p6)
}
  0x85   : > { %s3091_s30 = smov 4   ;;  %s3092_s4 = smov 64  }
  0x86   : > { %1944 = dma.hbm_to_vmem [thread:$0]  (!%p2660_p3), %s2656_s3, 1024, %s2665_s11, %s2669_s7, %s3092_s4, %s3092_s4, %s3091_s30  }
  0x87   : > { %s3093_s20 = sshll.u32 %s2630_s2, 10  ;;  %s500_s24 = scalar_lea.vmem [#allocation15], %s2649_s12 }
  0x88   : > { %s2708_s14 = scalar_lea.hbm %s3014_s10, %s3093_s20  ;;  %s509_s28 = sshll.u32 %s500_s24, 4  ;;  %s2732_s28 = int_to_ptr.vmem [resolvable:$true] %s509_s28 }
  0x89   : > { %s2381_s27 = smov [#allocation4]   ;;  %s2382_s22 = smov [#allocation9]  }
  0x8a   : > { %s384_s9 = sshll.u32 %s2381_s27, 4  ;;  %s414_s26 = sshll.u32 %s2382_s22, 4  ;;  %s385_s9 = int_to_ptr.vmem [resolvable:$true] %s384_s9  ;;  %s415_s26 = int_to_ptr.vmem [resolvable:$true] %s414_s26 }
  0x8b   : > { %s2158_s18 = scalar_lea.hbm %s3005_s1, 128 }
  0x8c   : > { %p2159_p8 = scmp.ne.s32.totalorder %s3005_s1, %s2158_s18  ;;  %p2165_p5 = scmp.lt.u32.totalorder %s2158_s18, %s3005_s1 }
  0x8e   : > { %p2161_p12 = pnand %p2159_p8, %p2539_p0 }
  0x90   : > { %p2162_p7 = pneg %p2161_p12 }
  0x92   : > { %p2167_p11 = pnand %p2165_p5, %p2162_p7 }
  0x94   : > { %2170 = shalt.err (!%p2167_p11)
}
  0x95   : > { %s2171_s12 = scalar_lea.vmem %s385_s9, 128  ;;  %p2179_p2 = scmp.lt.s32.totalorder %s385_s9, %s385_s9 }
  0x96   : > { %p2172_p13 = scmp.ne.s32.totalorder %s385_s9, %s2171_s12  ;;  %p2180_p1 = scmp.lt.s32.totalorder %s2171_s12, %s2171_s12 }
  0x98   : > { %p2174_p4 = pnand %p2172_p13, %p2539_p0  ;;  %p2181_p6 = por %p2180_p1, %p2179_p2 }
  0x9a   : > { %p2175_p10 = pneg %p2174_p4 }
  0x9c   : > { %p2182_p9 = pnand %p2181_p6, %p2175_p10 }
  0x9e   : > { %2185 = shalt.err (!%p2182_p9)
}
  0x9f   : > { %p3094_p8 = scmp.ne.s32.totalorder %s3074_s21, 0  ;;  %s2186_s16 = scalar_lea.hbm %s3009_s5, 1024 }
  0xa0   : > { %p2187_p9 = scmp.ne.s32.totalorder %s3009_s5, %s2186_s16  ;;  %p2193_p5 = scmp.lt.u32.totalorder %s2186_s16, %s3009_s5 }
  0xa1   : > { %1928 = dma.hbm_to_vmem [thread:$0]  (!%p3094_p8), %s3005_s1, 128, %s385_s9, [#allocation5], %s3092_s4, %s3092_s4, %s3091_s30  }
  0xa2   : > { %p2189_p12 = pnand %p2187_p9, %p2539_p0 }
  0xa4   : > { %p2190_p7 = pneg %p2189_p12 }
  0xa6   : > { %p2195_p11 = pnand %p2193_p5, %p2190_p7 }
  0xa8   : > { %2198 = shalt.err (!%p2195_p11)
}
  0xa9   : > { %s2199_s9 = scalar_lea.vmem %s415_s26, 1024  ;;  %p2207_p2 = scmp.lt.s32.totalorder %s415_s26, %s415_s26 }
  0xaa   : > { %p2200_p13 = scmp.ne.s32.totalorder %s415_s26, %s2199_s9  ;;  %p2208_p1 = scmp.lt.s32.totalorder %s2199_s9, %s2199_s9 }
  0xac   : > { %p2202_p4 = pnand %p2200_p13, %p2539_p0  ;;  %p2209_p6 = por %p2208_p1, %p2207_p2 }
  0xae   : > { %p2203_p10 = pneg %p2202_p4 }
  0xb0   : > { %p2210_p3 = pnand %p2209_p6, %p2203_p10 }
  0xb2   : > { %2213 = shalt.err (!%p2210_p3)
}
  0xb3   : > { %1934 = dma.hbm_to_vmem [thread:$0]  (!%p3094_p8), %s3009_s5, 1024, %s415_s26, [#allocation8], %s3092_s4, %s3092_s4, %s3091_s30  }
  0xb4   : > { %s2214_s19 = scalar_lea.hbm %s2584_s23, 1024  ;;  %p3095_p9 = scmp.ne.s32.totalorder %s3080_s6, 0 }
  0xb5   : > { %p2215_p0 = scmp.ne.s32.totalorder %s2584_s23, %s2214_s19  ;;  %s2219_s12 = scalar_lea.hbm %s3012_s8, 5120 }
  0xb6   : > { %p3096_p12 = pneg %p3095_p9  ;;  %p2220_p5 = scmp.lt.u32.totalorder %s2584_s23, %s3012_s8 }
  0xb7   : > { %p2221_p11 = scmp.lt.u32.totalorder %s2219_s12, %s2214_s19  ;;  %p2223_p4 = scmp.lt.u32.totalorder %s2214_s19, %s2584_s23 }
  0xb8   : > { %p2217_p7 = pnand %p2215_p0, %p3096_p12 }
  0xb9   : > { %p2222_p13 = por %p2221_p11, %p2220_p5 }
  0xba   : > { %p2218_p3 = pneg %p2217_p7 }
  0xbb   : > { %p2224_p10 = por %p2223_p4, %p2222_p13 }
  0xbd   : > { %p2225_p2 = pnand %p2224_p10, %p2218_p3 }
  0xbf   : > { %2228 = shalt.err (!%p2225_p2)
}
  0xc0   : > { %s2229_s26 = scalar_lea.vmem %s2701_s13, 1024  ;;  %p3097_p1 = pmov %p3096_p12 }
  0xc1   : > { %p2230_p8 = scmp.ne.s32.totalorder %s2701_s13, %s2229_s26  ;;  %s2383_s18 = smov [#allocation12]  }
  0xc2   : > { %s2234_s22 = sshll.u32 %s2383_s18, 4  ;;  %s2235_s22 = int_to_ptr.vmem [resolvable:$false] %s2234_s22 }
  0xc3   : > { %p2232_p6 = pnand %p2230_p8, %p3097_p1  ;;  %s2236_s16 = scalar_lea.vmem %s2235_s22, 2048 }
  0xc4   : > { %p2237_p12 = scmp.lt.s32.totalorder %s2701_s13, %s2235_s22  ;;  %p2238_p7 = scmp.lt.s32.totalorder %s2236_s16, %s2229_s26 }
  0xc5   : > { %p2233_p0 = pneg %p2232_p6 }
  0xc6   : > { %p2239_p5 = por %p2238_p7, %p2237_p12 }
  0xc8   : > { %p2240_p11 = pnand %p2239_p5, %p2233_p0 }
  0xca   : > { %2243 = shalt.err (!%p2240_p11)
}
  0xcb   : > { %1941 = dma.hbm_to_vmem [thread:$0]  (!%p3095_p9), %s2584_s23, 1024, %s2701_s13, %s2588_s0, %s3092_s4, %s3092_s4, %s3091_s30  }
  0xcc   : > { %s2244_s17 = scalar_lea.hbm %s2708_s14, 1024  ;;  %p3098_p13 = scmp.ne.s32.totalorder %s3089_s25, 0 }
  0xcd   : > { %p2245_p3 = scmp.ne.s32.totalorder %s2708_s14, %s2244_s17  ;;  %s2249_s27 = scalar_lea.hbm %s3014_s10, 4096 }
  0xce   : > { %p3099_p4 = pneg %p3098_p13  ;;  %p2250_p8 = scmp.lt.u32.totalorder %s2708_s14, %s3014_s10 }
  0xcf   : > { %p2251_p1 = scmp.lt.u32.totalorder %s2249_s27, %s2244_s17  ;;  %p2253_p0 = scmp.lt.u32.totalorder %s2244_s17, %s2708_s14 }
  0xd0   : > { %p2247_p10 = pnand %p2245_p3, %p3099_p4 }
  0xd1   : > { %p2252_p6 = por %p2251_p1, %p2250_p8 }
  0xd2   : > { %p2248_p2 = pneg %p2247_p10 }
  0xd3   : > { %p2254_p12 = por %p2253_p0, %p2252_p6 }
  0xd5   : > { %p2255_p7 = pnand %p2254_p12, %p2248_p2 }
  0xd7   : > { %2258 = shalt.err (!%p2255_p7)
}
  0xd8   : > { %s2259_s0 = scalar_lea.vmem %s2732_s28, 1024  ;;  %p3100_p5 = pmov %p3099_p4 }
  0xd9   : > { %p2260_p9 = scmp.ne.s32.totalorder %s2732_s28, %s2259_s0  ;;  %s2384_s23 = smov [#allocation15]  }
  0xda   : > { %s2264_s13 = sshll.u32 %s2384_s23, 4  ;;  %s2265_s13 = int_to_ptr.vmem [resolvable:$false] %s2264_s13 }
  0xdb   : > { %p2262_p11 = pnand %p2260_p9, %p3100_p5  ;;  %s2266_s11 = scalar_lea.vmem %s2265_s13, 2048 }
  0xdc   : > { %p2267_p4 = scmp.lt.s32.totalorder %s2732_s28, %s2265_s13  ;;  %p2268_p10 = scmp.lt.s32.totalorder %s2266_s11, %s2259_s0 }
  0xdd   : > { %p2263_p3 = pneg %p2262_p11 }
  0xde   : > { %p2269_p8 = por %p2268_p10, %p2267_p4 }
  0xe0   : > { %p2270_p1 = pnand %p2269_p8, %p2263_p3 }
  0xe2   : > { %2273 = shalt.err (!%p2270_p1)
}
  0xe3   : > { %1947 = dma.hbm_to_vmem [thread:$0]  (!%p3098_p13), %s2708_s14, 1024, %s2732_s28, %s2669_s7, %s3092_s4, %s3092_s4, %s3091_s30  }
  0xe4   : > { %s3101_s2 = sld [smem:[#allocation29_spill]] }
  0xea   : > { %p3102_p2 = scmp.ne.s32.totalorder %s3101_s2, 0 }
  0xeb   : > { %s3103_s19 = sld [smem:[#allocation26_spill]] (!%p3102_p2) }
  0xec   : > { %535 = sbr.rel (%p3102_p2) target bundleno = 1892 (0x764), region = 72 }
  0xf1   : > { %p3104_p6 = scmp.eq.s32.totalorder (!%p3102_p2), %s3103_s19, 0 }
  0xf3   : > { %2329 = dma.done.wait (%p3104_p6), [#allocation5], 128   ;;  %p3105_p0 = pmov %p3104_p6 }
  0xf5   : > { %2331 = vsyncadd (%p3105_p0), [#allocation5], 4294967168  ;;  %p3106_p12 = pmov %p3105_p0 }
  0xf6   : > { %p3107_p7 = pmov %p3105_p0 }
  0xf7   : > { %2333 = dma.done.wait (%p3106_p12), [#allocation8], 1088  }
  0xf8   : > { %2335 = vsyncadd (%p3107_p7), [#allocation8], 4294966208  ;;  %s3108_s25 = sld [smem:[#allocation24_spill]]  ;;  %s3109_s20 = sld [smem:[#allocation27_spill]] }
  0xf9   : > { %s549_s21 = sand.u32 1, %s3103_s19  }
  0xfa   : > { %s550_s4 = scalar_lea.sflag [#allocation11], %s549_s21 }
  0xfe   : > { %s551_s7 = sand.u32 1, %s3108_s25   ;;  %p3110_p13 = scmp.ne.s32.totalorder %s3109_s20, 0 }
  0xff   : > { %s1655_s30 = sshll.u32 %s551_s7, 6 }
 0x100   : > { %s2821_s14 = scalar_lea.vmem [#allocation10], %s1655_s30 }
 0x101   : > { %2337 = dma.done.wait (%p3110_p13), %s550_s4, 2048  }
 0x102   : > { %2339 = vsyncadd (%p3110_p13), %s550_s4, 4294965248  ;;  %s3111_s28 = sld [smem:[#allocation22_spill]]  ;;  %s3112_s12 = sld [smem:[#allocation28_spill]] }
 0x103   : > { %s2828_s26 = scalar_lea.vmem [#allocation12], %s1655_s30  ;;  %s568_s18 = scalar_lea.sflag [#allocation14], %s549_s21 }
 0x108   : > { %s569_s29 = sand.u32 1, %s3111_s28   ;;  %p3113_p9 = scmp.ne.s32.totalorder %s3112_s12, 0 }
 0x109   : > { %s1657_s15 = sshll.u32 %s569_s29, 6 }
 0x10a   : > { %s2830_s22 = scalar_lea.vmem [#allocation13], %s1657_s15 }
 0x10b   : > { %2341 = dma.done.wait (%p3113_p9), %s568_s18, 2048  }
 0x10c   : > { %2343 = vsyncadd (%p3113_p9), %s568_s18, 4294965248  ;;  %p645_p5 = scmp.lt.s32.totalorder %s3103_s19, 4  ;;  %s3114_s3 = sld [smem:[#allocation40_spill]] }
 0x10d   : > { %s3115_s13 = sld [smem:[#allocation41_spill]]  ;;  %s2848_s2 = scalar_lea.vmem [#allocation15], %s1657_s15 }
 0x10e   : > { %s646_s16 = scalar_select %p645_p5, %s3103_s19, 4 }
 0x10f   : > { %p3116_p11 = scmp.ne.s32.totalorder %s3103_s19, 0 }
 0x110   : > { %s1659_s17 = sshll.u32 %s646_s16, 1  ;;  %s1660_s24 = sshll.u32 %s646_s16, 2  ;;  %v2385_v2 = vmov (!%p3116_p11), 0.0  }
 0x111   : > { %658 = sbr.rel (%p3116_p11) target bundleno = 281 (0x119), region = 104  ;;  %s3117_s21 = sld [smem:[#allocation33_spill]] (!%p3116_p11)  ;;  %663 = vst [vmem:[#allocation3] sm:$0xff] (!%p3116_p11), %v2385_v2 }
 0x112   : > { %s2841_s9 = scalar_lea.vmem %s3114_s3, %s1659_s17 }
 0x113   : > { %s2846_s11 = scalar_lea.vmem %s3115_s13, %s1660_s24 }
 0x117   : > { %v659_v0 = vld [vmem:[%s3117_s21] sm:$0xff] (!%p3116_p11)  ;;  %v660_v1 = vld [vmem:[%s3117_s21 + $0x8] sm:$0xff] (!%p3116_p11) }
 0x118   : > { %661 = vst [vmem:[#allocation2] sm:$0xff] %v659_v0  ;;  %662 = vst [vmem:[#allocation2 + $0x8] sm:$0xff] %v660_v1 }
 0x119 PF: > { %v2858_v3 = vld [vmem:[#allocation3] sm:$0xff]  ;;  %vm679_vm0 = vcmask 1043456   ;;  %v2386_v4 = vmov 0.0   ;;  %vm2387_vm1 = vmmov 0   ;;  %s3118_s28 = sld [smem:[#allocation34_spill]]  ;;  %vm675_vm2 = vcmask 64512  }
 0x11a   : > { %1777 = vmatprep.subr.bf16.mxu0 %v2386_v4  ;;  %v669_v5 = vpack.c.bf16 %v2858_v3, %v2858_v3  ;;  %1779 = vmatprep.mubr.msk.bf16.mxu0 %vm2387_vm1, %v2386_v4  ;;  %v2029_v8 = vld [vmem:[%s2821_s14] sm:$0xff]   ;;  %v2030_v9 = vld [vmem:[%s2821_s14 + $0x8] sm:$0xff]   ;;  %v2031_v10 = vld [vmem:[%s2821_s14 + $0x10] sm:$0xff]   ;;  %vm743_vm3 = vcmask 130048  }
 0x11b   : > { %1783 = vmatprep.subr.bf16.mxu1 %v2386_v4  ;;  %1785 = vmatprep.mubr.msk.bf16.mxu1 %vm2387_vm1, %v2386_v4  ;;  %v2032_v11 = vld [vmem:[%s2821_s14 + $0x18] sm:$0xff]   ;;  %v2033_v12 = vld [vmem:[%s2821_s14 + $0x20] sm:$0xff]   ;;  %v2034_v13 = vld [vmem:[%s2821_s14 + $0x28] sm:$0xff]  }
 0x11c   : > { %v681_v7 = vsel %vm679_vm0, %v669_v5, 0  ;;  %v1664_v16 = vld [vmem:[%s2846_s11] ss:$0 sm:$0xff]  ;;  %v2028_v28 = vld [vmem:[#allocation4] sm:$0xff]   ;;  %v2037_v31 = vld [vmem:[%s2828_s26] sm:$0xff]  }
 0x11d   : > { %1778 = vmatpush3.bf16.msra.mxu0 %v681_v7  ;;  %v2035_v29 = vld [vmem:[%s2821_s14 + $0x30] sm:$0xff]   ;;  %v2036_v30 = vld [vmem:[%s2821_s14 + $0x38] sm:$0xff]   ;;  %v2038_v32 = vld [vmem:[%s2828_s26 + $0x8] sm:$0xff]   ;;  %s3119_s14 = sld [smem:[#allocation26_spill]] }
 0x11e   : > { %1789 = vmatprep.subr.bf16.mxu0 %v2386_v4  ;;  %v2039_v33 = vld [vmem:[%s2828_s26 + $0x10] sm:$0xff]   ;;  %v2040_v34 = vld [vmem:[%s2828_s26 + $0x18] sm:$0xff]   ;;  %v2041_v35 = vld [vmem:[%s2828_s26 + $0x20] sm:$0xff]  }
 0x11f   : > { %v2027_v6 = vld [vmem:[%s3118_s28] sm:$0xff]   ;;  %v665_v17 = vld [vmem:[#allocation2 + $0x8] sm:$0xff]  ;;  %v2043_v44 = vld [vmem:[%s2828_s26 + $0x30] sm:$0xff]  }
 0x120   : > { %1780 = vmatmul.mubr.msk.bf16.vlgmr.msra.gmra.mrb[0].mxu0 %vm675_vm2, %v2027_v6  ;;  %v664_v14 = vld [vmem:[#allocation2] sm:$0xff]  ;;  %v2042_v36 = vld [vmem:[%s2828_s26 + $0x28] sm:$0xff]  }
 0x121   : > { %1805 = vmatprep.mubr.msk.bf16.mxu0 %vm2387_vm1, %v2386_v4  ;;  %1790 = vmatpush3.bf16.msra.mxu0 %v2029_v8  ;;  %v2044_v45 = vld [vmem:[%s2828_s26 + $0x38] sm:$0xff]  }
 0x122   : > { %1791 = vmatprep.subr.bf16.mxu0 %v2386_v4  ;;  %v1667_v46 = vld [vmem:[%s2841_s9] ss:$0 sm:$0xff]  ;;  %v1676_v56 = vld [vmem:[%s2846_s11 + $0x1] ss:$0 sm:$0xff] }
 0x123   : > { %p1685_p3 = scmp.eq.s32.totalorder %s3119_s14, 4 }
 0x124   : > { %v1022_v2 = vld [vmem:[#allocation7] sm:$0xf] (!%p1685_p3)  ;;  %v2388_v5 = vmov (!%p1685_p3), 0.0   ;;  %vm2389_vm4 = vmmov (!%p1685_p3), 0   ;;  %v2046_v6 = vld [vmem:[%s2830_s22 + $0x8] sm:$0xff] (!%p1685_p3)   ;;  %v2047_v7 = vld [vmem:[%s2830_s22 + $0x10] sm:$0xff] (!%p1685_p3)  }
 0x125   : > { %1792 = vmatpush3.bf16.msra.mxu0 %v2030_v9  ;;  %v2048_v8 = vld [vmem:[%s2830_s22 + $0x18] sm:$0xff] (!%p1685_p3)   ;;  %v2049_v9 = vld [vmem:[%s2830_s22 + $0x20] sm:$0xff] (!%p1685_p3)  }
 0x126   : > { %1793 = vmatprep.subr.bf16.mxu0 %v2386_v4 }
 0x129   : > { %1794 = vmatpush3.bf16.msra.mxu0 %v2031_v10  ;;  %v2050_v10 = vld [vmem:[%s2830_s22 + $0x28] sm:$0xff] (!%p1685_p3)  }
 0x12a   : > { %1795 = vmatprep.subr.bf16.mxu0 %v2386_v4 }
 0x12d   : > { %1796 = vmatpush3.bf16.msra.mxu0 %v2032_v11  ;;  %v2051_v11 = vld [vmem:[%s2830_s22 + $0x30] sm:$0xff] (!%p1685_p3)  }
 0x12e   : > { %1797 = vmatprep.subr.bf16.mxu0 %v2386_v4 }
 0x131   : > { %1798 = vmatpush3.bf16.msra.mxu0 %v2033_v12  ;;  %v2052_v12 = vld [vmem:[%s2830_s22 + $0x38] sm:$0xff] (!%p1685_p3)  }
 0x132   : > { %1799 = vmatprep.subr.bf16.mxu0 %v2386_v4 }
 0x135   : > { %1800 = vmatpush3.bf16.msra.mxu0 %v2034_v13  ;;  %v2053_v13 = vld [vmem:[%s2848_s2] sm:$0xff] (!%p1685_p3)  }
 0x136   : > { %1801 = vmatprep.subr.bf16.mxu0 %v2386_v4 }
 0x139   : > { %1802 = vmatpush3.bf16.msra.mxu0 %v2035_v29 }
 0x13a   : > { %1803 = vmatprep.subr.bf16.mxu0 %v2386_v4 }
 0x13d   : > { %1804 = vmatpush3.bf16.msra.mxu0 %v2036_v30 }
 0x13e   : > { %1829 = vmatprep.subr.bf16.mxu0 (!%p1685_p3), %v2388_v5 }
 0x1f3   : > { %v717_v15 = vpop.f32.mrb[0].mxu0 }
 0x1f4   : > { %v2887_v18 = vadd.f32 %v717_v15, %v664_v14  ;;  %v1781_v19 = vpop.f32.mrb[1].mxu0  ;;  %v2054_v14 = vld [vmem:[%s2848_s2 + $0x8] sm:$0xff] (!%p1685_p3)   ;;  %v2055_v15 = vld [vmem:[%s2848_s2 + $0x10] sm:$0xff] (!%p1685_p3)  }
 0x1f5   : > { %v720_v20 = vpop.f32.mrb[2].mxu0 }
 0x1f6   : > { %v731_v21 = vadd.f32 %v1664_v16, %v2887_v18  ;;  %v2890_v22 = vadd.f32 %v720_v20, %v665_v17  ;;  %v1782_v23 = vpop.f32.mrb[3].mxu0  ;;  %v2057_v17 = vld [vmem:[%s2848_s2 + $0x20] sm:$0xff] (!%p1685_p3)  }
 0x1f8   : > { %v732_v24 = vadd.f32 %v1664_v16, %v2890_v22  ;;  %v733_v25 = vmax.f32 %v731_v21, 0.0  ;;  %v1023_v1 = vpack.c.bf16 (!%p1685_p3), %v2890_v22, %v2887_v18  ;;  %v2056_v16 = vld [vmem:[%s2848_s2 + $0x18] sm:$0xff] (!%p1685_p3)  }
 0x1fa   : > { %v734_v26 = vmax.f32 %v732_v24, 0.0 }
 0x1fc   : > { %v737_v27 = vpack.c.bf16 %v734_v26, %v733_v25  ;;  %v2059_v25 = vld [vmem:[%s2848_s2 + $0x30] sm:$0xff] (!%p1685_p3)   ;;  %v2060_v26 = vld [vmem:[%s2848_s2 + $0x38] sm:$0xff] (!%p1685_p3)  }
 0x1fe   : > { %1784 = vmatpush3.bf16.msra.mxu1 %v737_v27  ;;  %v1687_v27 = vld [vmem:[%s2841_s9 + $0x1] ss:$0 sm:$0xff] (!%p1685_p3) }
 0x1ff   : > { %1809 = vmatprep.subr.bf16.mxu1 %v2386_v4 }
 0x201   : > { %1786 = vmatmul.mubr.msk.bf16.vlgmr.msra.gmra.mrb[0].mxu1 %vm743_vm3, %v2028_v28 }
 0x202   : > { %1825 = vmatprep.mubr.msk.bf16.mxu1 %vm2387_vm1, %v2386_v4  ;;  %1810 = vmatpush3.bf16.msra.mxu1 %v2037_v31 }
 0x203   : > { %1811 = vmatprep.subr.bf16.mxu1 %v2386_v4 }
 0x206   : > { %1812 = vmatpush3.bf16.msra.mxu1 %v2038_v32 }
 0x207   : > { %1813 = vmatprep.subr.bf16.mxu1 %v2386_v4 }
 0x20a   : > { %1814 = vmatpush3.bf16.msra.mxu1 %v2039_v33 }
 0x20b   : > { %1815 = vmatprep.subr.bf16.mxu1 %v2386_v4 }
 0x20e   : > { %1816 = vmatpush3.bf16.msra.mxu1 %v2040_v34 }
 0x20f   : > { %1817 = vmatprep.subr.bf16.mxu1 %v2386_v4 }
 0x212   : > { %1818 = vmatpush3.bf16.msra.mxu1 %v2041_v35 }
 0x213   : > { %1819 = vmatprep.subr.bf16.mxu1 %v2386_v4 }
 0x216   : > { %1820 = vmatpush3.bf16.msra.mxu1 %v2042_v36 }
 0x217   : > { %1821 = vmatprep.subr.bf16.mxu1 %v2386_v4 }
 0x21a   : > { %1822 = vmatpush3.bf16.msra.mxu1 %v2043_v44 }
 0x21b   : > { %1823 = vmatprep.subr.bf16.mxu1 %v2386_v4  ;;  %v2045_v4 = vld [vmem:[%s2830_s22] sm:$0xff] (!%p1685_p3)  }
 0x21e   : > { %1824 = vmatpush3.bf16.msra.mxu1 %v2044_v45 }
 0x21f   : > { %1835 = vmatprep.subr.bf16.mxu1 (!%p1685_p3), %v2388_v5 }
 0x2d4   : > { %v781_v37 = vpop.f32.mrb[0].mxu1 }
 0x2d5   : > { %v1787_v38 = vpop.f32.mrb[1].mxu1  ;;  %v788_v40 = vadd.f32 %v781_v37, %v2887_v18  ;;  %v2058_v18 = vld [vmem:[%s2848_s2 + $0x28] sm:$0xff] (!%p1685_p3)  }
 0x2d6   : > { %v784_v39 = vpop.f32.mrb[2].mxu1 }
 0x2d7   : > { %v789_v41 = vadd.f32 %v784_v39, %v2890_v22  ;;  %v1788_v42 = vpop.f32.mrb[3].mxu1 }
 0x2d9   : > { %v790_v43 = vpack.c.bf16 %v789_v41, %v788_v40 }
 0x2db   : > { %1806 = vmatmul.mubr.bf16.vlgmr.msra.gmra.mrb[4].mxu0 %v790_v43 }
 0x2dc   : > { %1830 = vmatpush3.bf16.msra.mxu0 (!%p1685_p3), %v1023_v1  ;;  %1831 = vmatprep.mubr.msk.bf16.mxu0 (!%p1685_p3), %vm2389_vm4, %v2388_v5 }
 0x2dd   : > { %1855 = vmatprep.subr.bf16.mxu0 (!%p1685_p3), %v2388_v5 }
 0x2e3   : > { %1832 = vmatmul.mubr.msk.bf16.vlgmr.msra.gmra.mrb[0].mxu0 (!%p1685_p3), %vm743_vm3, %v1022_v2 }
 0x2e4   : > { %1871 = vmatprep.mubr.msk.bf16.mxu0 (!%p1685_p3), %vm2389_vm4, %v2388_v5  ;;  %1856 = vmatpush3.bf16.msra.mxu0 (!%p1685_p3), %v2053_v13 }
 0x2e5   : > { %1857 = vmatprep.subr.bf16.mxu0 (!%p1685_p3), %v2388_v5 }
 0x2e8   : > { %1858 = vmatpush3.bf16.msra.mxu0 (!%p1685_p3), %v2054_v14 }
 0x2e9   : > { %1859 = vmatprep.subr.bf16.mxu0 (!%p1685_p3), %v2388_v5 }
 0x2ec   : > { %1860 = vmatpush3.bf16.msra.mxu0 (!%p1685_p3), %v2055_v15 }
 0x2ed   : > { %1861 = vmatprep.subr.bf16.mxu0 (!%p1685_p3), %v2388_v5 }
 0x2f0   : > { %1862 = vmatpush3.bf16.msra.mxu0 (!%p1685_p3), %v2056_v16 }
 0x2f1   : > { %1863 = vmatprep.subr.bf16.mxu0 (!%p1685_p3), %v2388_v5 }
 0x2f4   : > { %1864 = vmatpush3.bf16.msra.mxu0 (!%p1685_p3), %v2057_v17 }
 0x2f5   : > { %1865 = vmatprep.subr.bf16.mxu0 (!%p1685_p3), %v2388_v5 }
 0x2f8   : > { %1866 = vmatpush3.bf16.msra.mxu0 (!%p1685_p3), %v2058_v18 }
 0x2f9   : > { %1867 = vmatprep.subr.bf16.mxu0 (!%p1685_p3), %v2388_v5 }
 0x2fc   : > { %1868 = vmatpush3.bf16.msra.mxu0 (!%p1685_p3), %v2059_v25 }
 0x2fd   : > { %1869 = vmatprep.subr.bf16.mxu0 (!%p1685_p3), %v2388_v5 }
 0x300   : > { %1870 = vmatpush3.bf16.msra.mxu0 (!%p1685_p3), %v2060_v26 }
 0x3ae   : > { %v894_v47 = vpop.f32.mrb[4].mxu0 }
 0x3af   : > { %v895_v48 = vadd.f32 %v1667_v46, %v894_v47  ;;  %v1807_v49 = vpop.f32.mrb[5].mxu0 }
 0x3b0   : > { %v897_v50 = vpop.f32.mrb[6].mxu0 }
 0x3b1   : > { %v898_v51 = vadd.f32 %v1667_v46, %v897_v50  ;;  %v1808_v52 = vpop.f32.mrb[7].mxu0  ;;  %v901_v53 = vmax.f32 %v895_v48, 0.0 }
 0x3b3   : > { %v902_v54 = vmax.f32 %v898_v51, 0.0 }
 0x3b5   : > { %v903_v55 = vpack.c.bf16 %v902_v54, %v901_v53 }
 0x3b6   : > { %v1061_v19 = vpop.f32.mrb[0].mxu0 (!%p1685_p3) }
 0x3b7   : > { %1826 = vmatmul.mubr.bf16.vlgmr.msra.gmra.mrb[4].mxu1 %v903_v55  ;;  %v1062_v20 = vadd.f32 (!%p1685_p3), %v1061_v19, %v2858_v3  ;;  %v1833_v21 = vpop.f32.mrb[1].mxu0 (!%p1685_p3)  ;;  %v1696_v3 = vld [vmem:[%s2846_s11 + $0x2] ss:$0 sm:$0xff] (!%p1685_p3) }
 0x3b8   : > { %1836 = vmatpush3.bf16.msra.mxu1 (!%p1685_p3), %v2045_v4  ;;  %1851 = vmatprep.mubr.msk.bf16.mxu1 (!%p1685_p3), %vm2389_vm4, %v2388_v5  ;;  %v1064_v22 = vpop.f32.mrb[2].mxu0 (!%p1685_p3) }
 0x3b9   : > { %1837 = vmatprep.subr.bf16.mxu1 (!%p1685_p3), %v2388_v5  ;;  %v1067_v23 = vpack.c.bf16 (!%p1685_p3), %v1062_v20, %v1062_v20  ;;  %v1834_v24 = vpop.f32.mrb[3].mxu0 (!%p1685_p3) }
 0x3bc   : > { %1838 = vmatpush3.bf16.msra.mxu1 (!%p1685_p3), %v2046_v6 }
 0x3bd   : > { %1839 = vmatprep.subr.bf16.mxu1 (!%p1685_p3), %v2388_v5 }
 0x3c0   : > { %1840 = vmatpush3.bf16.msra.mxu1 (!%p1685_p3), %v2047_v7 }
 0x3c1   : > { %1841 = vmatprep.subr.bf16.mxu1 (!%p1685_p3), %v2388_v5 }
 0x3c4   : > { %1842 = vmatpush3.bf16.msra.mxu1 (!%p1685_p3), %v2048_v8 }
 0x3c5   : > { %1843 = vmatprep.subr.bf16.mxu1 (!%p1685_p3), %v2388_v5 }
 0x3c8   : > { %1844 = vmatpush3.bf16.msra.mxu1 (!%p1685_p3), %v2049_v9 }
 0x3c9   : > { %1845 = vmatprep.subr.bf16.mxu1 (!%p1685_p3), %v2388_v5 }
 0x3cc   : > { %1846 = vmatpush3.bf16.msra.mxu1 (!%p1685_p3), %v2050_v10 }
 0x3cd   : > { %1847 = vmatprep.subr.bf16.mxu1 (!%p1685_p3), %v2388_v5 }
 0x3d0   : > { %1848 = vmatpush3.bf16.msra.mxu1 (!%p1685_p3), %v2051_v11 }
 0x3d1   : > { %1849 = vmatprep.subr.bf16.mxu1 (!%p1685_p3), %v2388_v5 }
 0x3d4   : > { %1850 = vmatpush3.bf16.msra.mxu1 (!%p1685_p3), %v2052_v12 }
 0x3d7   : > { %1852 = vmatmul.mubr.bf16.vlgmr.msra.gmra.mrb[0].mxu1 (!%p1685_p3), %v1067_v23 }
 0x487   : > { %1017 = sbr.rel (%p1685_p3) target bundleno = 1418 (0x58a), region = 108 }
 0x48a   : > { %v1007_v57 = vpop.f32.mrb[4].mxu1 }
 0x48b   : > { %v2919_v58 = vadd.f32 %v1676_v56, %v1007_v57  ;;  %v1827_v59 = vpop.f32.mrb[5].mxu1 }
 0x48c   : > { %v1010_v60 = vpop.f32.mrb[6].mxu1 }
 0x48d   : > { %v2921_v61 = vadd.f32 %v1676_v56, %v1010_v60  ;;  %v1828_v62 = vpop.f32.mrb[7].mxu1  ;;  %v1018_v63 = vmax.f32 (!%p1685_p3), %v2919_v58, 0.0 }
 0x48f   : > { %v1019_v0 = vmax.f32 %v2921_v61, 0.0  ;;  %1020 = vst [vmem:[#allocation2] sm:$0xff] %v1018_v63 }
 0x491   : > { %1021 = vst [vmem:[#allocation2 + $0x8] sm:$0xff] %v1019_v0 }
 0x4aa   : > { %v1171_v28 = vpop.f32.mrb[0].mxu1 }
 0x4ab   : > { %v1172_v29 = vadd.f32 %v1687_v27, %v1171_v28  ;;  %v1853_v30 = vpop.f32.mrb[1].mxu1 }
 0x4ac   : > { %v1174_v31 = vpop.f32.mrb[2].mxu1 }
 0x4ad   : > { %v1177_v32 = vmax.f32 %v1172_v29, 0.0  ;;  %v1854_v33 = vpop.f32.mrb[3].mxu1 }
 0x4af   : > { %v1178_v34 = vpack.c.bf16 %v1177_v32, %v1177_v32 }
 0x4b1   : > { %1872 = vmatmul.mubr.bf16.vlgmr.msra.gmra.mrb[4].mxu0 %v1178_v34 }
 0x584   : > { %v1282_v35 = vpop.f32.mrb[4].mxu0 }
 0x585   : > { %v1283_v36 = vadd.f32 %v1696_v3, %v1282_v35  ;;  %v1873_v37 = vpop.f32.mrb[5].mxu0 }
 0x586   : > { %v1285_v38 = vpop.f32.mrb[6].mxu0 }
 0x587   : > { %v1288_v39 = vmax.f32 %v1283_v36, 0.0  ;;  %v1874_v40 = vpop.f32.mrb[7].mxu0 }
 0x589   : > { %1289 = vst [vmem:[#allocation3] sm:$0xff] %v1288_v39 }
 0x58a PF: > { %s3120_s12 = sld [smem:[#allocation26_spill]] }
 0x590   : > { %p1705_p4 = scmp.ne.s32.totalorder %s3120_s12, 4 }
 0x591   : > { %v1294_v41 = vpack.c.bf16 (!%p1705_p4), %v2921_v61, %v2919_v58  ;;  %s3121_s26 = sld [smem:[#allocation36_spill]] (!%p1705_p4)  ;;  %v2390_v43 = vmov (!%p1705_p4), 0.0   ;;  %vm2391_vm5 = vmmov (!%p1705_p4), 0   ;;  %v2062_v44 = vld [vmem:[#allocation9] sm:$0xff] (!%p1705_p4)   ;;  %v1293_v45 = vld [vmem:[#allocation7] sm:$0xf] (!%p1705_p4) }
 0x592   : > { %1292 = sbr.rel (%p1705_p4) target bundleno = 1861 (0x745), region = 112  ;;  %1875 = vmatprep.subr.bf16.mxu0 (!%p1705_p4), %v2390_v43  ;;  %1877 = vmatprep.mubr.msk.bf16.mxu0 (!%p1705_p4), %vm2391_vm5, %v2390_v43  ;;  %v2392_v46 = vmov (!%p1705_p4), 0   ;;  %v2063_v47 = vld [vmem:[#allocation9 + $0x8] sm:$0xff] (!%p1705_p4)   ;;  %v2064_v48 = vld [vmem:[#allocation9 + $0x10] sm:$0xff] (!%p1705_p4)   ;;  %v2065_v49 = vld [vmem:[#allocation9 + $0x18] sm:$0xff] (!%p1705_p4)   ;;  %s3122_s16 = sld [smem:[#allocation37_spill]] (!%p1705_p4) }
 0x593   : > { %1876 = vmatpush3.bf16.msra.mxu0 (!%p1705_p4), %v1294_v41  ;;  %2061 = vset.pattern.permute.xlu0 (!%p1705_p4), %v2392_v46  ;;  %v2066_v50 = vld [vmem:[#allocation9 + $0x20] sm:$0xff] (!%p1705_p4)   ;;  %v2067_v51 = vld [vmem:[#allocation9 + $0x28] sm:$0xff] (!%p1705_p4)   ;;  %v2068_v52 = vld [vmem:[#allocation9 + $0x30] sm:$0xff] (!%p1705_p4)  }
 0x594   : > { %1881 = vmatprep.subr.bf16.mxu1 (!%p1705_p4), %v2390_v43  ;;  %1897 = vmatprep.mubr.msk.bf16.mxu1 (!%p1705_p4), %vm2391_vm5, %v2390_v43  ;;  %v2069_v53 = vld [vmem:[#allocation9 + $0x38] sm:$0xff] (!%p1705_p4)  }
 0x595   : > { %1882 = vmatpush3.bf16.msra.mxu1 (!%p1705_p4), %v2062_v44 }
 0x596   : > { %1878 = vmatmul.mubr.msk.bf16.vlgmr.msra.gmra.mrb[0].mxu0 (!%p1705_p4), %vm743_vm3, %v1293_v45  ;;  %1883 = vmatprep.subr.bf16.mxu1 (!%p1705_p4), %v2390_v43 }
 0x597   : > { %v1338_v42 = vld [vmem:[%s3121_s26] sm:$0xff] (!%p1705_p4) }
 0x598   : > { %1341 = vperm.xlu0 (!%p1705_p4), %2061, %v1338_v42   ;;  %v1707_v61 = vld [vmem:[%s3122_s16] ss:$0 sm:$0xff] (!%p1705_p4) }
 0x599   : > { %1884 = vmatpush3.bf16.msra.mxu1 %v2063_v47 }
 0x59a   : > { %1885 = vmatprep.subr.bf16.mxu1 %v2390_v43 }
 0x59d   : > { %1886 = vmatpush3.bf16.msra.mxu1 %v2064_v48 }
 0x59e   : > { %1887 = vmatprep.subr.bf16.mxu1 %v2390_v43 }
 0x5a1   : > { %1888 = vmatpush3.bf16.msra.mxu1 %v2065_v49 }
 0x5a2   : > { %1889 = vmatprep.subr.bf16.mxu1 %v2390_v43 }
 0x5a5   : > { %1890 = vmatpush3.bf16.msra.mxu1 %v2066_v50 }
 0x5a6   : > { %1891 = vmatprep.subr.bf16.mxu1 %v2390_v43 }
 0x5a9   : > { %1892 = vmatpush3.bf16.msra.mxu1 %v2067_v51 }
 0x5aa   : > { %1893 = vmatprep.subr.bf16.mxu1 %v2390_v43 }
 0x5ad   : > { %1894 = vmatpush3.bf16.msra.mxu1 %v2068_v52 }
 0x5ae   : > { %1895 = vmatprep.subr.bf16.mxu1 %v2390_v43 }
 0x5b1   : > { %1896 = vmatpush3.bf16.msra.mxu1 %v2069_v53 }
 0x617   : > { %v1342_v54 = vpop.permute.xlu0 %1341 }
 0x669   : > { %v1332_v55 = vpop.f32.mrb[0].mxu0 }
 0x66a   : > { %v1344_v56 = vmul.f32 %v1342_v54, %v1332_v55  ;;  %v1879_v57 = vpop.f32.mrb[1].mxu0 }
 0x66b   : > { %v1335_v58 = vpop.f32.mrb[2].mxu0 }
 0x66c   : > { %v1345_v59 = vpack.c.bf16 %v1344_v56, %v1344_v56  ;;  %v1880_v60 = vpop.f32.mrb[3].mxu0 }
 0x66e   : > { %1898 = vmatmul.mubr.bf16.vlgmr.msra.gmra.mrb[0].mxu1 %v1345_v59 }
 0x741   : > { %v1451_v62 = vpop.f32.mrb[0].mxu1 }
 0x742   : > { %v1452_v63 = vadd.f32 %v1707_v61, %v1451_v62  ;;  %v1899_v0 = vpop.f32.mrb[1].mxu1 }
 0x743   : > { %v1454_v1 = vpop.f32.mrb[2].mxu1 }
 0x744   : > { %1457 = vst [vmem:[#allocation16] sm:$0xff] %v1452_v63  ;;  %v1900_v2 = vpop.f32.mrb[3].mxu1 }
 0x745 PF: > { %s2393_s17 = smov [#allocation16]  }
 0x746   : > { %s1465_s6 = sshll.u32 %s2393_s17, 4  ;;  %s1466_s6 = int_to_ptr.vmem [resolvable:$true] %s1465_s6 }
 0x747   : > { %s2274_s27 = scalar_lea.vmem %s1466_s6, 128  ;;  %p2281_p2 = scmp.lt.s32.totalorder %s1466_s6, %s1466_s6 }
 0x748   : > { %p2275_p10 = scmp.ne.s32.totalorder %s1466_s6, %s2274_s27  ;;  %p2282_p6 = scmp.lt.s32.totalorder %s2274_s27, %s2274_s27 }
 0x74a   : > { %p2276_p8 = pnand %p2275_p10, %p1685_p3  ;;  %p2283_p0 = por %p2282_p6, %p2281_p2 }
 0x74c   : > { %p2277_p1 = pneg %p2276_p8 }
 0x74e   : > { %p2284_p12 = pnand %p2283_p0, %p2277_p1 }
 0x750   : > { %2287 = shalt.err (!%p2284_p12)
}
 0x751   : > { %s3124_s0 = sld [smem:[#allocation42_spill]] }
 0x757   : > { %s2288_s23 = scalar_lea.hbm %s3124_s0, 128 }
 0x758   : > { %p2289_p7 = scmp.ne.s32.totalorder %s3124_s0, %s2288_s23  ;;  %p2294_p5 = scmp.lt.u32.totalorder %s2288_s23, %s3124_s0 }
 0x75a   : > { %p2290_p13 = pnand %p2289_p7, %p1685_p3 }
 0x75c   : > { %p2291_p9 = pneg %p2290_p13 }
 0x75e   : > { %p2296_p11 = pnand %p2294_p5, %p2291_p9 }
 0x760   : > { %2299 = shalt.err (!%p2296_p11)
}
 0x761   : > { %1922 = dma.vmem_to_hbm [thread:$0]  (%p1685_p3), %s1466_s6, 128, %s3124_s0, [#allocation6]  }
 0x762   : > { %2345 = dma.done.wait (%p1685_p3), [#allocation6], 128  }
 0x763   : > { %2347 = vsyncadd (%p1685_p3), [#allocation6], 4294967168 }
 0x764 PF: > { %s3125_s14 = sld [smem:[#allocation30_spill]]  ;;  %s3126_s25 = sld [smem:[#allocation22_spill]] }
 0x765   : > { %s3127_s26 = sld [smem:[#allocation23_spill]]  ;;  %s3128_s27 = sld [smem:[#allocation32_spill]] }
 0x766   : > { %s3129_s28 = sld [smem:[#allocation24_spill]]  ;;  %s3130_s29 = sld [smem:[#allocation25_spill]] }
 0x767   : > { %s3131_s30 = sld [smem:[#allocation31_spill]] }
 0x76a   : > { %p29_p4 = scmp.ge.s32.totalorder %s3125_s14, 7  }
 0x76c   :  { %31 = sbr.rel (!%p29_p4) target bundleno = 21 (0x15), region = 175 }
 0x773   :  { %1478 = vsyncpa [#allocation5], 1 }
 0x774   :  { %1480 = vsyncpa [#allocation5 + $0x1], 1 }
 0x775   :  { %1481 = vsyncpa [#allocation8], 1 }
 0x776   :  { %1482 = vsyncpa [#allocation11], 1 }
 0x777   :  { %1484 = vsyncpa [#allocation11 + $0x1], 1 }
 0x778   :  { %1485 = vsyncpa [#allocation14], 1 }
 0x779   :  { %1487 = vsyncpa [#allocation14 + $0x1], 1 }
 0x77a   :  { %1488 = vsyncpa [#allocation6], 1 }
 0x77b   :  { %1490 = vsyncpa [#allocation6 + $0x1], 1 }

</bundles_post_ra>
